<compile_context>
chip_gen: v6e
topology: v6e:2x2x1
jax: 0.10.0
libtpu: 0.0.40
codegen_flags: <defaults>
</compile_context>

<pallas_src>
import functools
import math

import jax
import jax.numpy as jnp
from jax.experimental import pallas as pl
from jax.experimental.pallas import tpu as pltpu


_MASK_VALUE = -0.7 * float(jnp.finfo(jnp.float32).max)


def _pick_tile(dim, target, multiple):
    """Largest divisor of `dim` that is <= target and a multiple of `multiple`
    (or the full dim). Keeps blocks large (amortizes ~0.35us/step overhead)
    while satisfying the TPU (8, 128) block-shape rule."""
    if dim <= target:
        return dim
    for t in range(target, 0, -1):
        if dim % t == 0 and (t % multiple == 0):
            return t
    return dim  # fall back to a single block


# ----------------------------------------------------------------------------
# Tiled matmul kernel (used for the fused QKV projection and o_proj)
# ----------------------------------------------------------------------------
def _matmul_kernel(x_ref, w_ref, o_ref, acc_ref):
    @pl.when(pl.program_id(2) == 0)
    def _init():
        acc_ref[...] = jnp.zeros_like(acc_ref)

    acc_ref[...] += jnp.dot(x_ref[...], w_ref[...],
                            preferred_element_type=jnp.float32)

    @pl.when(pl.program_id(2) == pl.num_programs(2) - 1)
    def _finalize():
        o_ref[...] = acc_ref[...].astype(o_ref.dtype)


def matmul_pallas(x, w, *, tm_target=256, tn_target=512, tk_target=512):
    M, K = x.shape
    K2, N = w.shape
    assert K == K2
    tm = _pick_tile(M, tm_target, 8)
    tn = _pick_tile(N, tn_target, 128)
    tk = _pick_tile(K, tk_target, 128)
    grid = (M // tm, N // tn, K // tk)
    return pl.pallas_call(
        _matmul_kernel,
        out_shape=jax.ShapeDtypeStruct((M, N), x.dtype),
        grid_spec=pltpu.PrefetchScalarGridSpec(
            num_scalar_prefetch=0,
            grid=grid,
            in_specs=[
                pl.BlockSpec((tm, tk), lambda i, j, k: (i, k)),
                pl.BlockSpec((tk, tn), lambda i, j, k: (k, j)),
            ],
            out_specs=pl.BlockSpec((tm, tn), lambda i, j, k: (i, j)),
            scratch_shapes=[pltpu.VMEM((tm, tn), jnp.float32)],
        ),
        compiler_params=pltpu.CompilerParams(
            dimension_semantics=("parallel", "parallel", "arbitrary")),
    )(x, w)


# ----------------------------------------------------------------------------
# Rotary position embedding kernel (non-interleaved, ro_dim == head_dim)
# x layout: (seq, batch*heads, head_dim); cos/sin: (seq, head_dim // 2)
# ----------------------------------------------------------------------------
def _rope_kernel(x_ref, cos_ref, sin_ref, o_ref):
    x = x_ref[...].astype(jnp.float32)                    # (ts, BH, D)
    c = cos_ref[...].astype(jnp.float32)[:, None, :]      # (ts, 1, D/2)
    s = sin_ref[...].astype(jnp.float32)[:, None, :]
    half = x.shape[-1] // 2
    x1 = x[..., :half]
    x2 = x[..., half:]
    # x*[cos,cos] + rotate_half(x)*[sin,sin]  with rotate_half(x)=[-x2, x1]
    out = jnp.concatenate([x1 * c - x2 * s, x2 * c + x1 * s], axis=-1)
    o_ref[...] = out.astype(o_ref.dtype)


def rope_pallas(x, cos2d, sin2d, *, block_bytes=4 << 20):
    S, BH, D = x.shape
    Dh = cos2d.shape[-1]
    assert 2 * Dh == D, "only full rotary (ro_dim == head_dim) is supported"
    bytes_per_row = BH * D * x.dtype.itemsize
    ts_target = max(8, block_bytes // max(bytes_per_row, 1))
    ts = _pick_tile(S, ts_target, 8)
    return pl.pallas_call(
        _rope_kernel,
        out_shape=jax.ShapeDtypeStruct((S, BH, D), x.dtype),
        grid_spec=pltpu.PrefetchScalarGridSpec(
            num_scalar_prefetch=0,
            grid=(S // ts,),
            in_specs=[
                pl.BlockSpec((ts, BH, D), lambda i: (i, 0, 0)),
                pl.BlockSpec((ts, Dh), lambda i: (i, 0)),
                pl.BlockSpec((ts, Dh), lambda i: (i, 0)),
            ],
            out_specs=pl.BlockSpec((ts, BH, D), lambda i: (i, 0, 0)),
        ),
        compiler_params=pltpu.CompilerParams(
            dimension_semantics=("parallel",)),
    )(x, cos2d, sin2d)


# ----------------------------------------------------------------------------
# Causal flash attention kernel. q/k/v layout: (batch*heads, seq, head_dim)
# ----------------------------------------------------------------------------
def _flash_attn_kernel(q_ref, k_ref, v_ref, o_ref, m_scr, l_scr, acc_scr,
                       *, scale, tq, tk):
    qi = pl.program_id(1)
    ki = pl.program_id(2)

    @pl.when(ki == 0)
    def _init():
        m_scr[...] = jnp.full_like(m_scr, -jnp.inf)
        l_scr[...] = jnp.zeros_like(l_scr)
        acc_scr[...] = jnp.zeros_like(acc_scr)

    # Skip kv blocks that lie entirely above the causal diagonal.
    @pl.when(ki * tk <= qi * tq + (tq - 1))
    def _compute():
        q = q_ref[0].astype(jnp.float32)                  # (tq, D)
        k = k_ref[0].astype(jnp.float32)                  # (tk, D)
        v = v_ref[0].astype(jnp.float32)                  # (tk, D)

        s = jax.lax.dot_general(q, k, (((1,), (1,)), ((), ())),
                                preferred_element_type=jnp.float32) * scale

        q_pos = qi * tq + jax.lax.broadcasted_iota(jnp.int32, (tq, tk), 0)
        k_pos = ki * tk + jax.lax.broadcasted_iota(jnp.int32, (tq, tk), 1)
        s = jnp.where(q_pos >= k_pos, s, _MASK_VALUE)

        m_prev = m_scr[...]
        m_new = jnp.maximum(m_prev, jnp.max(s, axis=-1, keepdims=True))
        alpha = jnp.exp(m_prev - m_new)
        p = jnp.exp(s - m_new)
        l_scr[...] = alpha * l_scr[...] + jnp.sum(p, axis=-1, keepdims=True)
        acc_scr[...] = alpha * acc_scr[...] + jnp.dot(
            p, v, preferred_element_type=jnp.float32)
        m_scr[...] = m_new

    @pl.when(ki == pl.num_programs(2) - 1)
    def _finalize():
        o_ref[0] = (acc_scr[...] / l_scr[...]).astype(o_ref.dtype)


def flash_attention_pallas(q, k, v, *, scale, tq_target=256, tk_target=512):
    BH, S, D = q.shape
    Sk = k.shape[1]
    tq = _pick_tile(S, tq_target, 8)
    tk = _pick_tile(Sk, tk_target, 8)
    kernel = functools.partial(_flash_attn_kernel, scale=scale, tq=tq, tk=tk)
    return pl.pallas_call(
        kernel,
        out_shape=jax.ShapeDtypeStruct((BH, S, D), q.dtype),
        grid_spec=pltpu.PrefetchScalarGridSpec(
            num_scalar_prefetch=0,
            grid=(BH, S // tq, Sk // tk),
            in_specs=[
                pl.BlockSpec((1, tq, D), lambda b, qi, ki: (b, qi, 0)),
                pl.BlockSpec((1, tk, D), lambda b, qi, ki: (b, ki, 0)),
                pl.BlockSpec((1, tk, D), lambda b, qi, ki: (b, ki, 0)),
            ],
            out_specs=pl.BlockSpec((1, tq, D), lambda b, qi, ki: (b, qi, 0)),
            scratch_shapes=[
                pltpu.VMEM((tq, 1), jnp.float32),   # running max
                pltpu.VMEM((tq, 1), jnp.float32),   # running denom
                pltpu.VMEM((tq, D), jnp.float32),   # output accumulator
            ],
        ),
        compiler_params=pltpu.CompilerParams(
            dimension_semantics=("parallel", "parallel", "arbitrary")),
    )(q, k, v)


# ----------------------------------------------------------------------------
# Full Z2allAttention forward (hidden_states layout: (seq, batch, hidden))
# ----------------------------------------------------------------------------
def z2all_attention_forward(hidden_states, cos, sin, wq, wk, wv, wo,
                            *, n_heads, n_kv_heads, softmax_scale=None):
    S, B, H = hidden_states.shape
    D = H // n_heads
    q_dim = n_heads * D
    kv_dim = n_kv_heads * D

    # --- fused q/k/v projections (single Pallas matmul) ---
    x2d = hidden_states.reshape(S * B, H)
    wqkv = jnp.concatenate([wq, wk, wv], axis=1)          # (H, q_dim + 2*kv_dim)
    qkv = matmul_pallas(x2d, wqkv)
    q = qkv[:, :q_dim].reshape(S, B, n_heads, D)
    k = qkv[:, q_dim:q_dim + kv_dim].reshape(S, B, n_kv_heads, D)
    v = qkv[:, q_dim + kv_dim:].reshape(S, B, n_kv_heads, D)

    # --- rotary embedding (Pallas kernel) ---
    cos2d = cos.reshape(S, -1).astype(hidden_states.dtype)
    sin2d = sin.reshape(S, -1).astype(hidden_states.dtype)
    q = rope_pallas(q.reshape(S, B * n_heads, D), cos2d, sin2d)
    q = q.reshape(S, B, n_heads, D)
    k = rope_pallas(k.reshape(S, B * n_kv_heads, D), cos2d, sin2d)
    k = k.reshape(S, B, n_kv_heads, D)

    # --- GQA: repeat kv heads (== repeat_kv / repeat_interleave) ---
    n_rep = n_heads // n_kv_heads
    if n_rep > 1:
        k = jnp.repeat(k, n_rep, axis=2)
        v = jnp.repeat(v, n_rep, axis=2)

    # --- causal flash attention (Pallas kernel) ---
    qb = q.transpose(1, 2, 0, 3).reshape(B * n_heads, S, D)
    kb = k.transpose(1, 2, 0, 3).reshape(B * n_heads, S, D)
    vb = v.transpose(1, 2, 0, 3).reshape(B * n_heads, S, D)
    scale = softmax_scale if softmax_scale is not None else 1.0 / math.sqrt(D)
    ob = flash_attention_pallas(qb, kb, vb, scale=float(scale))

    # --- output projection ---
    attn = ob.reshape(B, n_heads, S, D).transpose(2, 0, 1, 3).reshape(S * B, H)
    out = matmul_pallas(attn, wo)
    return out.reshape(S, B, H)


# ----------------------------------------------------------------------------
# Pure-JAX reference (same math, standard softmax attention)
# ----------------------------------------------------------------------------
def z2all_attention_reference(hidden_states, cos, sin, wq, wk, wv, wo,
                              *, n_heads, n_kv_heads):
    S, B, H = hidden_states.shape
    D = H // n_heads
    x = hidden_states.reshape(S * B, H)
    q = (x @ wq).reshape(S, B, n_heads, D)
    k = (x @ wk).reshape(S, B, n_kv_heads, D)
    v = (x @ wv).reshape(S, B, n_kv_heads, D)

    c = cos.reshape(S, 1, 1, -1)
    s_ = sin.reshape(S, 1, 1, -1)
    half = D // 2

    def rope(t):
        t1, t2 = t[..., :half], t[..., half:]
        return jnp.concatenate([t1 * c - t2 * s_, t2 * c + t1 * s_], axis=-1)

    q, k = rope(q), rope(k)
    n_rep = n_heads // n_kv_heads
    if n_rep > 1:
        k = jnp.repeat(k, n_rep, axis=2)
        v = jnp.repeat(v, n_rep, axis=2)

    qb = q.transpose(1, 2, 0, 3)
    kb = k.transpose(1, 2, 0, 3)
    vb = v.transpose(1, 2, 0, 3)
    scores = jnp.einsum('bhqd,bhkd->bhqk', qb, kb) / math.sqrt(D)
    causal = jnp.tril(jnp.ones((S, S), dtype=bool))
    scores = jnp.where(causal[None, None], scores, -jnp.inf)
    p = jax.nn.softmax(scores.astype(jnp.float32), axis=-1).astype(qb.dtype)
    o = jnp.einsum('bhqk,bhkd->bhqd', p, vb)
    o = o.transpose(2, 0, 1, 3).reshape(S * B, H)
    return (o @ wo).reshape(S, B, H)


if __name__ == "__main__":
    # Small config consistent with the module: (q_len, bsz, hidden) layout.
    B, S = 2, 8
    H = 128
    n_heads, n_kv_heads = 2, 1          # GQA with n_rep = 2
    D = H // n_heads
    rope_theta = 10000.0

    key = jax.random.PRNGKey(0)
    k1, k2, k3, k4, k5 = jax.random.split(key, 5)
    hidden_states = jax.random.normal(k1, (S, B, H), dtype=jnp.float32)
    # (in, out) weights == torch Linear.weight.T; attention_bias = False
    wq = jax.random.normal(k2, (H, n_heads * D), dtype=jnp.float32) * (H ** -0.5)
    wk = jax.random.normal(k3, (H, n_kv_heads * D), dtype=jnp.float32) * (H ** -0.5)
    wv = jax.random.normal(k4, (H, n_kv_heads * D), dtype=jnp.float32) * (H ** -0.5)
    wo = jax.random.normal(k5, (H, H), dtype=jnp.float32) * (H ** -0.5)

    # Standard RoPE tables, shape (seq, 1, 1, head_dim/2) as in the module.
    pos = jnp.arange(S, dtype=jnp.float32)
    inv_freq = 1.0 / (rope_theta ** (jnp.arange(0, D, 2, dtype=jnp.float32) / D))
    freqs = pos[:, None] * inv_freq[None, :]
    cos = jnp.cos(freqs).reshape(S, 1, 1, D // 2)
    sin = jnp.sin(freqs).reshape(S, 1, 1, D // 2)

    fwd = jax.jit(functools.partial(z2all_attention_forward,
                                    n_heads=n_heads, n_kv_heads=n_kv_heads))
    out = fwd(hidden_states, cos, sin, wq, wk, wv, wo)
    out = jax.block_until_ready(out)

    ref = z2all_attention_reference(hidden_states, cos, sin, wq, wk, wv, wo,
                                    n_heads=n_heads, n_kv_heads=n_kv_heads)

    assert out.shape == (S, B, H) and out.dtype == hidden_states.dtype
    max_err = float(jnp.max(jnp.abs(out - ref)))
    assert jnp.allclose(out, ref, atol=5e-2, rtol=5e-2), f"max abs err {max_err}"
    print("KERNEL_OK")
</pallas_src>

<mosaic_0001>
module attributes {stable_mosaic.version = 11 : i64} {
  func.func @_matmul_kernel(%arg0: i32, %arg1: i32, %arg2: i32, %arg3: memref<16x128xf32, #tpu.memory_space<vmem>>, %arg4: memref<128x256xf32, #tpu.memory_space<vmem>>, %arg5: memref<16x256xf32, #tpu.memory_space<vmem>>, %arg6: memref<16x256xf32, #tpu.memory_space<vmem>>) attributes {dimension_semantics = [#tpu.dimension_semantics<parallel>, #tpu.dimension_semantics<parallel>, #tpu.dimension_semantics<arbitrary>], iteration_bounds = array<i64: 1, 1, 1>, scalar_prefetch = 0 : i64, scratch_operands = 1 : i64, tpu.core_type = #tpu.core_type<tc>, window_params = [{transform_indices = @transform_0, window_bounds = array<i64: 16, 128>}, {transform_indices = @transform_1, window_bounds = array<i64: 128, 256>}, {transform_indices = @transform_2, window_bounds = array<i64: 16, 256>}]} {
    %c0_i32 = arith.constant 0 : i32
    %0 = arith.cmpi eq, %arg2, %c0_i32 : i32
    %1 = arith.extui %0 : i1 to i32
    %c0_i32_0 = arith.constant 0 : i32
    %2 = arith.cmpi ne, %1, %c0_i32_0 : i32
    scf.if %2 {
      %cst_10 = arith.constant 0.000000e+00 : f32
      %12 = vector.broadcast %cst_10 : f32 to vector<16x256xf32>
      %c0_11 = arith.constant 0 : index
      %c0_12 = arith.constant 0 : index
      %13 = vector.load %arg6[%c0_11, %c0_12] : memref<16x256xf32, #tpu.memory_space<vmem>>, vector<16x256xf32>
      tpu.vector_store %arg6[%c0_11, %c0_12], %12 {strides = array<i32>} : memref<16x256xf32, #tpu.memory_space<vmem>>, vector<16x256xf32>,
    } else {
    }
    %c0 = arith.constant 0 : index
    %c0_1 = arith.constant 0 : index
    %3 = vector.load %arg6[%c0, %c0_1] : memref<16x256xf32, #tpu.memory_space<vmem>>, vector<16x256xf32>
    %c0_2 = arith.constant 0 : index
    %c0_3 = arith.constant 0 : index
    %4 = vector.load %arg3[%c0_2, %c0_3] : memref<16x128xf32, #tpu.memory_space<vmem>>, vector<16x128xf32>
    %c0_4 = arith.constant 0 : index
    %c0_5 = arith.constant 0 : index
    %5 = vector.load %arg4[%c0_4, %c0_5] : memref<128x256xf32, #tpu.memory_space<vmem>>, vector<128x256xf32>
    %cst = arith.constant dense<0.000000e+00> : vector<16x256xf32>
    %6 = tpu.matmul %4, %5, %cst {dimension_numbers = #tpu.dot_dimension_numbers<[1], [0], [0], [1], [0, 0, 1, 1], [], []>} : vector<16x128xf32>, vector<128x256xf32>, vector<16x256xf32> -> vector<16x256xf32>
    %7 = arith.addf %3, %6 : vector<16x256xf32>
    %c0_6 = arith.constant 0 : index
    %c0_7 = arith.constant 0 : index
    %8 = vector.load %arg6[%c0_6, %c0_7] : memref<16x256xf32, #tpu.memory_space<vmem>>, vector<16x256xf32>
    tpu.vector_store %arg6[%c0_6, %c0_7], %7 {strides = array<i32>} : memref<16x256xf32, #tpu.memory_space<vmem>>, vector<16x256xf32>,
    %c0_i32_8 = arith.constant 0 : i32
    %9 = arith.cmpi eq, %arg2, %c0_i32_8 : i32
    %10 = arith.extui %9 : i1 to i32
    %c0_i32_9 = arith.constant 0 : i32
    %11 = arith.cmpi ne, %10, %c0_i32_9 : i32
    scf.if %11 {
      %c0_10 = arith.constant 0 : index
      %c0_11 = arith.constant 0 : index
      %12 = vector.load %arg6[%c0_10, %c0_11] : memref<16x256xf32, #tpu.memory_space<vmem>>, vector<16x256xf32>
      %c0_12 = arith.constant 0 : index
      %c0_13 = arith.constant 0 : index
      %13 = vector.load %arg5[%c0_12, %c0_13] : memref<16x256xf32, #tpu.memory_space<vmem>>, vector<16x256xf32>
      tpu.vector_store %arg5[%c0_12, %c0_13], %12 {strides = array<i32>} : memref<16x256xf32, #tpu.memory_space<vmem>>, vector<16x256xf32>,
    } else {
    }
    return
  }
  func.func @transform_0(%arg0: i32, %arg1: i32, %arg2: i32) -> (i32, i32) {
    %c0_i32 = arith.constant 0 : i32
    return %arg0, %arg2 : i32, i32
  }
  func.func @transform_1(%arg0: i32, %arg1: i32, %arg2: i32) -> (i32, i32) {
    %c0_i32 = arith.constant 0 : i32
    return %arg2, %arg1 : i32, i32
  }
  func.func @transform_2(%arg0: i32, %arg1: i32, %arg2: i32) -> (i32, i32) {
    %c0_i32 = arith.constant 0 : i32
    return %arg0, %arg1 : i32, i32
  }
}

module attributes {stable_mosaic.version = 11 : i64} {
  func.func @_rope_kernel(%arg0: i32, %arg1: memref<8x4x64xf32, #tpu.memory_space<vmem>>, %arg2: memref<8x32xf32, #tpu.memory_space<vmem>>, %arg3: memref<8x32xf32, #tpu.memory_space<vmem>>, %arg4: memref<8x4x64xf32, #tpu.memory_space<vmem>>) attributes {dimension_semantics = [#tpu.dimension_semantics<parallel>], iteration_bounds = array<i64: 1>, scalar_prefetch = 0 : i64, scratch_operands = 0 : i64, tpu.core_type = #tpu.core_type<tc>, window_params = [{transform_indices = @transform_0, window_bounds = array<i64: 8, 4, 64>}, {transform_indices = @transform_1, window_bounds = array<i64: 8, 32>}, {transform_indices = @transform_2, window_bounds = array<i64: 8, 32>}, {transform_indices = @transform_3, window_bounds = array<i64: 8, 4, 64>}]} {
    %c0 = arith.constant 0 : index
    %c0_0 = arith.constant 0 : index
    %c0_1 = arith.constant 0 : index
    %0 = vector.load %arg1[%c0, %c0_0, %c0_1] : memref<8x4x64xf32, #tpu.memory_space<vmem>>, vector<8x4x64xf32>
    %c0_2 = arith.constant 0 : index
    %c0_3 = arith.constant 0 : index
    %1 = vector.load %arg2[%c0_2, %c0_3] : memref<8x32xf32, #tpu.memory_space<vmem>>, vector<8x32xf32>
    %2 = vector.shape_cast %1 : vector<8x32xf32> to vector<8x1x32xf32>
    %c0_4 = arith.constant 0 : index
    %c0_5 = arith.constant 0 : index
    %3 = vector.load %arg3[%c0_4, %c0_5] : memref<8x32xf32, #tpu.memory_space<vmem>>, vector<8x32xf32>
    %4 = vector.shape_cast %3 : vector<8x32xf32> to vector<8x1x32xf32>
    %5 = vector.extract_strided_slice %0 {offsets = [0, 0, 0], sizes = [8, 4, 32], strides = [1, 1, 1]} : vector<8x4x64xf32> to vector<8x4x32xf32>
    %6 = vector.extract_strided_slice %0 {offsets = [0, 0, 32], sizes = [8, 4, 32], strides = [1, 1, 1]} : vector<8x4x64xf32> to vector<8x4x32xf32>
    %7 = vector.broadcast %2 : vector<8x1x32xf32> to vector<8x4x32xf32>
    %8 = arith.mulf %5, %7 : vector<8x4x32xf32>
    %9 = vector.broadcast %4 : vector<8x1x32xf32> to vector<8x4x32xf32>
    %10 = arith.mulf %6, %9 : vector<8x4x32xf32>
    %11 = arith.subf %8, %10 : vector<8x4x32xf32>
    %12 = vector.broadcast %2 : vector<8x1x32xf32> to vector<8x4x32xf32>
    %13 = arith.mulf %6, %12 : vector<8x4x32xf32>
    %14 = vector.broadcast %4 : vector<8x1x32xf32> to vector<8x4x32xf32>
    %15 = arith.mulf %5, %14 : vector<8x4x32xf32>
    %16 = arith.addf %13, %15 : vector<8x4x32xf32>
    %17 = tpu.concatenate %11, %16 in 2 : vector<8x4x32xf32>, vector<8x4x32xf32> -> vector<8x4x64xf32>
    %c0_6 = arith.constant 0 : index
    %c0_7 = arith.constant 0 : index
    %c0_8 = arith.constant 0 : index
    %18 = vector.load %arg4[%c0_6, %c0_7, %c0_8] : memref<8x4x64xf32, #tpu.memory_space<vmem>>, vector<8x4x64xf32>
    tpu.vector_store %arg4[%c0_6, %c0_7, %c0_8], %17 {strides = array<i32>} : memref<8x4x64xf32, #tpu.memory_space<vmem>>, vector<8x4x64xf32>,
    return
  }
  func.func @transform_0(%arg0: i32) -> (i32, i32, i32) {
    %c0_i32 = arith.constant 0 : i32
    %c0_i32_0 = arith.constant 0 : i32
    %c0_i32_1 = arith.constant 0 : i32
    return %arg0, %c0_i32, %c0_i32_0 : i32, i32, i32
  }
  func.func @transform_1(%arg0: i32) -> (i32, i32) {
    %c0_i32 = arith.constant 0 : i32
    %c0_i32_0 = arith.constant 0 : i32
    return %arg0, %c0_i32 : i32, i32
  }
  func.func @transform_2(%arg0: i32) -> (i32, i32) {
    %c0_i32 = arith.constant 0 : i32
    %c0_i32_0 = arith.constant 0 : i32
    return %arg0, %c0_i32 : i32, i32
  }
  func.func @transform_3(%arg0: i32) -> (i32, i32, i32) {
    %c0_i32 = arith.constant 0 : i32
    %c0_i32_0 = arith.constant 0 : i32
    %c0_i32_1 = arith.constant 0 : i32
    return %arg0, %c0_i32, %c0_i32_0 : i32, i32, i32
  }
}

module attributes {stable_mosaic.version = 11 : i64} {
  func.func @_rope_kernel(%arg0: i32, %arg1: memref<8x2x64xf32, #tpu.memory_space<vmem>>, %arg2: memref<8x32xf32, #tpu.memory_space<vmem>>, %arg3: memref<8x32xf32, #tpu.memory_space<vmem>>, %arg4: memref<8x2x64xf32, #tpu.memory_space<vmem>>) attributes {dimension_semantics = [#tpu.dimension_semantics<parallel>], iteration_bounds = array<i64: 1>, scalar_prefetch = 0 : i64, scratch_operands = 0 : i64, tpu.core_type = #tpu.core_type<tc>, window_params = [{transform_indices = @transform_0, window_bounds = array<i64: 8, 2, 64>}, {transform_indices = @transform_1, window_bounds = array<i64: 8, 32>}, {transform_indices = @transform_2, window_bounds = array<i64: 8, 32>}, {transform_indices = @transform_3, window_bounds = array<i64: 8, 2, 64>}]} {
    %c0 = arith.constant 0 : index
    %c0_0 = arith.constant 0 : index
    %c0_1 = arith.constant 0 : index
    %0 = vector.load %arg1[%c0, %c0_0, %c0_1] : memref<8x2x64xf32, #tpu.memory_space<vmem>>, vector<8x2x64xf32>
    %c0_2 = arith.constant 0 : index
    %c0_3 = arith.constant 0 : index
    %1 = vector.load %arg2[%c0_2, %c0_3] : memref<8x32xf32, #tpu.memory_space<vmem>>, vector<8x32xf32>
    %2 = vector.shape_cast %1 : vector<8x32xf32> to vector<8x1x32xf32>
    %c0_4 = arith.constant 0 : index
    %c0_5 = arith.constant 0 : index
    %3 = vector.load %arg3[%c0_4, %c0_5] : memref<8x32xf32, #tpu.memory_space<vmem>>, vector<8x32xf32>
    %4 = vector.shape_cast %3 : vector<8x32xf32> to vector<8x1x32xf32>
    %5 = vector.extract_strided_slice %0 {offsets = [0, 0, 0], sizes = [8, 2, 32], strides = [1, 1, 1]} : vector<8x2x64xf32> to vector<8x2x32xf32>
    %6 = vector.extract_strided_slice %0 {offsets = [0, 0, 32], sizes = [8, 2, 32], strides = [1, 1, 1]} : vector<8x2x64xf32> to vector<8x2x32xf32>
    %7 = vector.broadcast %2 : vector<8x1x32xf32> to vector<8x2x32xf32>
    %8 = arith.mulf %5, %7 : vector<8x2x32xf32>
    %9 = vector.broadcast %4 : vector<8x1x32xf32> to vector<8x2x32xf32>
    %10 = arith.mulf %6, %9 : vector<8x2x32xf32>
    %11 = arith.subf %8, %10 : vector<8x2x32xf32>
    %12 = vector.broadcast %2 : vector<8x1x32xf32> to vector<8x2x32xf32>
    %13 = arith.mulf %6, %12 : vector<8x2x32xf32>
    %14 = vector.broadcast %4 : vector<8x1x32xf32> to vector<8x2x32xf32>
    %15 = arith.mulf %5, %14 : vector<8x2x32xf32>
    %16 = arith.addf %13, %15 : vector<8x2x32xf32>
    %17 = tpu.concatenate %11, %16 in 2 : vector<8x2x32xf32>, vector<8x2x32xf32> -> vector<8x2x64xf32>
    %c0_6 = arith.constant 0 : index
    %c0_7 = arith.constant 0 : index
    %c0_8 = arith.constant 0 : index
    %18 = vector.load %arg4[%c0_6, %c0_7, %c0_8] : memref<8x2x64xf32, #tpu.memory_space<vmem>>, vector<8x2x64xf32>
    tpu.vector_store %arg4[%c0_6, %c0_7, %c0_8], %17 {strides = array<i32>} : memref<8x2x64xf32, #tpu.memory_space<vmem>>, vector<8x2x64xf32>,
    return
  }
  func.func @transform_0(%arg0: i32) -> (i32, i32, i32) {
    %c0_i32 = arith.constant 0 : i32
    %c0_i32_0 = arith.constant 0 : i32
    %c0_i32_1 = arith.constant 0 : i32
    return %arg0, %c0_i32, %c0_i32_0 : i32, i32, i32
  }
  func.func @transform_1(%arg0: i32) -> (i32, i32) {
    %c0_i32 = arith.constant 0 : i32
    %c0_i32_0 = arith.constant 0 : i32
    return %arg0, %c0_i32 : i32, i32
  }
  func.func @transform_2(%arg0: i32) -> (i32, i32) {
    %c0_i32 = arith.constant 0 : i32
    %c0_i32_0 = arith.constant 0 : i32
    return %arg0, %c0_i32 : i32, i32
  }
  func.func @transform_3(%arg0: i32) -> (i32, i32, i32) {
    %c0_i32 = arith.constant 0 : i32
    %c0_i32_0 = arith.constant 0 : i32
    %c0_i32_1 = arith.constant 0 : i32
    return %arg0, %c0_i32, %c0_i32_0 : i32, i32, i32
  }
}

module attributes {stable_mosaic.version = 11 : i64} {
  func.func @_flash_attn_kernel(%arg0: i32, %arg1: i32, %arg2: i32, %arg3: memref<1x8x64xf32, #tpu.memory_space<vmem>>, %arg4: memref<1x8x64xf32, #tpu.memory_space<vmem>>, %arg5: memref<1x8x64xf32, #tpu.memory_space<vmem>>, %arg6: memref<1x8x64xf32, #tpu.memory_space<vmem>>, %arg7: memref<8x1xf32, #tpu.memory_space<vmem>>, %arg8: memref<8x1xf32, #tpu.memory_space<vmem>>, %arg9: memref<8x64xf32, #tpu.memory_space<vmem>>) attributes {dimension_semantics = [#tpu.dimension_semantics<parallel>, #tpu.dimension_semantics<parallel>, #tpu.dimension_semantics<arbitrary>], iteration_bounds = array<i64: 4, 1, 1>, scalar_prefetch = 0 : i64, scratch_operands = 3 : i64, tpu.core_type = #tpu.core_type<tc>, window_params = [{transform_indices = @transform_0, window_bounds = array<i64: 1, 8, 64>}, {transform_indices = @transform_1, window_bounds = array<i64: 1, 8, 64>}, {transform_indices = @transform_2, window_bounds = array<i64: 1, 8, 64>}, {transform_indices = @transform_3, window_bounds = array<i64: 1, 8, 64>}]} {
    %c0_i32 = arith.constant 0 : i32
    %0 = arith.cmpi eq, %arg2, %c0_i32 : i32
    %1 = arith.extui %0 : i1 to i32
    %c0_i32_0 = arith.constant 0 : i32
    %2 = arith.cmpi ne, %1, %c0_i32_0 : i32
    scf.if %2 {
      %cst = arith.constant 0xFF800000 : f32
      %12 = vector.broadcast %cst : f32 to vector<8x1xf32>
      %c0 = arith.constant 0 : index
      %c0_5 = arith.constant 0 : index
      %13 = vector.load %arg7[%c0, %c0_5] : memref<8x1xf32, #tpu.memory_space<vmem>>, vector<8x1xf32>
      tpu.vector_store %arg7[%c0, %c0_5], %12 {strides = array<i32>} : memref<8x1xf32, #tpu.memory_space<vmem>>, vector<8x1xf32>,
      %cst_6 = arith.constant 0.000000e+00 : f32
      %14 = vector.broadcast %cst_6 : f32 to vector<8x1xf32>
      %c0_7 = arith.constant 0 : index
      %c0_8 = arith.constant 0 : index
      %15 = vector.load %arg8[%c0_7, %c0_8] : memref<8x1xf32, #tpu.memory_space<vmem>>, vector<8x1xf32>
      tpu.vector_store %arg8[%c0_7, %c0_8], %14 {strides = array<i32>} : memref<8x1xf32, #tpu.memory_space<vmem>>, vector<8x1xf32>,
      %cst_9 = arith.constant 0.000000e+00 : f32
      %16 = vector.broadcast %cst_9 : f32 to vector<8x64xf32>
      %c0_10 = arith.constant 0 : index
      %c0_11 = arith.constant 0 : index
      %17 = vector.load %arg9[%c0_10, %c0_11] : memref<8x64xf32, #tpu.memory_space<vmem>>, vector<8x64xf32>
      tpu.vector_store %arg9[%c0_10, %c0_11], %16 {strides = array<i32>} : memref<8x64xf32, #tpu.memory_space<vmem>>, vector<8x64xf32>,
    } else {
    }
    %c8_i32 = arith.constant 8 : i32
    %3 = arith.muli %arg2, %c8_i32 : i32
    %c8_i32_1 = arith.constant 8 : i32
    %4 = arith.muli %arg1, %c8_i32_1 : i32
    %c7_i32 = arith.constant 7 : i32
    %5 = arith.addi %4, %c7_i32 : i32
    %6 = arith.cmpi sle, %3, %5 : i32
    %7 = arith.extui %6 : i1 to i32
    %c0_i32_2 = arith.constant 0 : i32
    %8 = arith.cmpi ne, %7, %c0_i32_2 : i32
    scf.if %8 {
      %c0 = arith.constant 0 : index
      %c0_5 = arith.constant 0 : index
      %c0_6 = arith.constant 0 : index
      %12 = vector.load %arg3[%c0, %c0_5, %c0_6] : memref<1x8x64xf32, #tpu.memory_space<vmem>>, vector<1x8x64xf32>
      %13 = vector.shape_cast %12 : vector<1x8x64xf32> to vector<8x64xf32>
      %c0_7 = arith.constant 0 : index
      %c0_8 = arith.constant 0 : index
      %c0_9 = arith.constant 0 : index
      %14 = vector.load %arg4[%c0_7, %c0_8, %c0_9] : memref<1x8x64xf32, #tpu.memory_space<vmem>>, vector<1x8x64xf32>
      %15 = vector.shape_cast %14 : vector<1x8x64xf32> to vector<8x64xf32>
      %c0_10 = arith.constant 0 : index
      %c0_11 = arith.constant 0 : index
      %c0_12 = arith.constant 0 : index
      %16 = vector.load %arg5[%c0_10, %c0_11, %c0_12] : memref<1x8x64xf32, #tpu.memory_space<vmem>>, vector<1x8x64xf32>
      %17 = vector.shape_cast %16 : vector<1x8x64xf32> to vector<8x64xf32>
      %cst = arith.constant dense<0.000000e+00> : vector<8x8xf32>
      %18 = tpu.matmul %13, %15, %cst {dimension_numbers = #tpu.dot_dimension_numbers<[1], [1], [0], [0], [0, 0, 1, 0], [], []>} : vector<8x64xf32>, vector<8x64xf32>, vector<8x8xf32> -> vector<8x8xf32>
      %cst_13 = arith.constant 1.250000e-01 : f32
      %19 = vector.broadcast %cst_13 : f32 to vector<8x8xf32>
      %20 = arith.mulf %18, %19 : vector<8x8xf32>
      %c8_i32_14 = arith.constant 8 : i32
      %21 = arith.muli %arg1, %c8_i32_14 : i32
      %22 = tpu.iota {dimensions = array<i32: 0>} : vector<8x8xi32>
      %23 = vector.broadcast %21 : i32 to vector<8x8xi32>
      %24 = arith.addi %23, %22 : vector<8x8xi32>
      %c8_i32_15 = arith.constant 8 : i32
      %25 = arith.muli %arg2, %c8_i32_15 : i32
      %26 = tpu.iota {dimensions = array<i32: 1>} : vector<8x8xi32>
      %27 = vector.broadcast %25 : i32 to vector<8x8xi32>
      %28 = arith.addi %27, %26 : vector<8x8xi32>
      %29 = arith.cmpi sge, %24, %28 : vector<8x8xi32>
      %cst_16 = arith.constant -2.38197633E+38 : f32
      %30 = vector.broadcast %cst_16 : f32 to vector<8x8xf32>
      %31 = arith.select %29, %20, %30 : vector<8x8xi1>, vector<8x8xf32>
      %c0_17 = arith.constant 0 : index
      %c0_18 = arith.constant 0 : index
      %32 = vector.load %arg7[%c0_17, %c0_18] : memref<8x1xf32, #tpu.memory_space<vmem>>, vector<8x1xf32>
      %cst_19 = arith.constant dense<0xFF800000> : vector<8xf32>
      %33 = vector.multi_reduction <maximumf>, %31, %cst_19 [1] : vector<8x8xf32> to vector<8xf32>
      %34 = vector.shape_cast %33 : vector<8xf32> to vector<8x1xf32>
      %35 = arith.maximumf %32, %34 : vector<8x1xf32>
      %36 = arith.subf %32, %35 : vector<8x1xf32>
      %37 = math.exp %36 : vector<8x1xf32>
      %38 = vector.broadcast %35 : vector<8x1xf32> to vector<8x8xf32>
      %39 = arith.subf %31, %38 : vector<8x8xf32>
      %40 = math.exp %39 : vector<8x8xf32>
      %c0_20 = arith.constant 0 : index
      %c0_21 = arith.constant 0 : index
      %41 = vector.load %arg8[%c0_20, %c0_21] : memref<8x1xf32, #tpu.memory_space<vmem>>, vector<8x1xf32>
      %42 = arith.mulf %37, %41 : vector<8x1xf32>
      %cst_22 = arith.constant dense<0.000000e+00> : vector<8xf32>
      %43 = vector.multi_reduction <add>, %40, %cst_22 [1] : vector<8x8xf32> to vector<8xf32>
      %44 = vector.shape_cast %43 : vector<8xf32> to vector<8x1xf32>
      %45 = arith.addf %42, %44 : vector<8x1xf32>
      %c0_23 = arith.constant 0 : index
      %c0_24 = arith.constant 0 : index
      %46 = vector.load %arg8[%c0_23, %c0_24] : memref<8x1xf32, #tpu.memory_space<vmem>>, vector<8x1xf32>
      tpu.vector_store %arg8[%c0_23, %c0_24], %45 {strides = array<i32>} : memref<8x1xf32, #tpu.memory_space<vmem>>, vector<8x1xf32>,
      %c0_25 = arith.constant 0 : index
      %c0_26 = arith.constant 0 : index
      %47 = vector.load %arg9[%c0_25, %c0_26] : memref<8x64xf32, #tpu.memory_space<vmem>>, vector<8x64xf32>
      %48 = vector.broadcast %37 : vector<8x1xf32> to vector<8x64xf32>
      %49 = arith.mulf %48, %47 : vector<8x64xf32>
      %cst_27 = arith.constant dense<0.000000e+00> : vector<8x64xf32>
      %50 = tpu.matmul %40, %17, %cst_27 {dimension_numbers = #tpu.dot_dimension_numbers<[1], [0], [0], [1], [0, 0, 1, 1], [], []>} : vector<8x8xf32>, vector<8x64xf32>, vector<8x64xf32> -> vector<8x64xf32>
      %51 = arith.addf %49, %50 : vector<8x64xf32>
      %c0_28 = arith.constant 0 : index
      %c0_29 = arith.constant 0 : index
      %52 = vector.load %arg9[%c0_28, %c0_29] : memref<8x64xf32, #tpu.memory_space<vmem>>, vector<8x64xf32>
      tpu.vector_store %arg9[%c0_28, %c0_29], %51 {strides = array<i32>} : memref<8x64xf32, #tpu.memory_space<vmem>>, vector<8x64xf32>,
      %c0_30 = arith.constant 0 : index
      %c0_31 = arith.constant 0 : index
      %53 = vector.load %arg7[%c0_30, %c0_31] : memref<8x1xf32, #tpu.memory_space<vmem>>, vector<8x1xf32>
      tpu.vector_store %arg7[%c0_30, %c0_31], %35 {strides = array<i32>} : memref<8x1xf32, #tpu.memory_space<vmem>>, vector<8x1xf32>,
    } else {
    }
    %c0_i32_3 = arith.constant 0 : i32
    %9 = arith.cmpi eq, %arg2, %c0_i32_3 : i32
    %10 = arith.extui %9 : i1 to i32
    %c0_i32_4 = arith.constant 0 : i32
    %11 = arith.cmpi ne, %10, %c0_i32_4 : i32
    scf.if %11 {
      %c0 = arith.constant 0 : index
      %c0_5 = arith.constant 0 : index
      %12 = vector.load %arg9[%c0, %c0_5] : memref<8x64xf32, #tpu.memory_space<vmem>>, vector<8x64xf32>
      %c0_6 = arith.constant 0 : index
      %c0_7 = arith.constant 0 : index
      %13 = vector.load %arg8[%c0_6, %c0_7] : memref<8x1xf32, #tpu.memory_space<vmem>>, vector<8x1xf32>
      %14 = vector.broadcast %13 : vector<8x1xf32> to vector<8x64xf32>
      %15 = arith.divf %12, %14 : vector<8x64xf32>
      %c0_8 = arith.constant 0 : index
      %c0_9 = arith.constant 0 : index
      %c0_10 = arith.constant 0 : index
      %16 = vector.load %arg6[%c0_8, %c0_9, %c0_10] : memref<1x8x64xf32, #tpu.memory_space<vmem>>, vector<1x8x64xf32>
      %17 = vector.shape_cast %16 : vector<1x8x64xf32> to vector<8x64xf32>
      %18 = vector.shape_cast %15 : vector<8x64xf32> to vector<1x8x64xf32>
      tpu.vector_store %arg6[%c0_8, %c0_9, %c0_10], %18 {strides = array<i32>} : memref<1x8x64xf32, #tpu.memory_space<vmem>>, vector<1x8x64xf32>,
    } else {
    }
    return
  }
  func.func @transform_0(%arg0: i32, %arg1: i32, %arg2: i32) -> (i32, i32, i32) {
    %c0_i32 = arith.constant 0 : i32
    %c0_i32_0 = arith.constant 0 : i32
    return %arg0, %arg1, %c0_i32 : i32, i32, i32
  }
  func.func @transform_1(%arg0: i32, %arg1: i32, %arg2: i32) -> (i32, i32, i32) {
    %c0_i32 = arith.constant 0 : i32
    %c0_i32_0 = arith.constant 0 : i32
    return %arg0, %arg2, %c0_i32 : i32, i32, i32
  }
  func.func @transform_2(%arg0: i32, %arg1: i32, %arg2: i32) -> (i32, i32, i32) {
    %c0_i32 = arith.constant 0 : i32
    %c0_i32_0 = arith.constant 0 : i32
    return %arg0, %arg2, %c0_i32 : i32, i32, i32
  }
  func.func @transform_3(%arg0: i32, %arg1: i32, %arg2: i32) -> (i32, i32, i32) {
    %c0_i32 = arith.constant 0 : i32
    %c0_i32_0 = arith.constant 0 : i32
    return %arg0, %arg1, %c0_i32 : i32, i32, i32
  }
}

module attributes {stable_mosaic.version = 11 : i64} {
  func.func @_matmul_kernel(%arg0: i32, %arg1: i32, %arg2: i32, %arg3: memref<16x128xf32, #tpu.memory_space<vmem>>, %arg4: memref<128x128xf32, #tpu.memory_space<vmem>>, %arg5: memref<16x128xf32, #tpu.memory_space<vmem>>, %arg6: memref<16x128xf32, #tpu.memory_space<vmem>>) attributes {dimension_semantics = [#tpu.dimension_semantics<parallel>, #tpu.dimension_semantics<parallel>, #tpu.dimension_semantics<arbitrary>], iteration_bounds = array<i64: 1, 1, 1>, scalar_prefetch = 0 : i64, scratch_operands = 1 : i64, tpu.core_type = #tpu.core_type<tc>, window_params = [{transform_indices = @transform_0, window_bounds = array<i64: 16, 128>}, {transform_indices = @transform_1, window_bounds = array<i64: 128, 128>}, {transform_indices = @transform_2, window_bounds = array<i64: 16, 128>}]} {
    %c0_i32 = arith.constant 0 : i32
    %0 = arith.cmpi eq, %arg2, %c0_i32 : i32
    %1 = arith.extui %0 : i1 to i32
    %c0_i32_0 = arith.constant 0 : i32
    %2 = arith.cmpi ne, %1, %c0_i32_0 : i32
    scf.if %2 {
      %cst_10 = arith.constant 0.000000e+00 : f32
      %12 = vector.broadcast %cst_10 : f32 to vector<16x128xf32>
      %c0_11 = arith.constant 0 : index
      %c0_12 = arith.constant 0 : index
      %13 = vector.load %arg6[%c0_11, %c0_12] : memref<16x128xf32, #tpu.memory_space<vmem>>, vector<16x128xf32>
      tpu.vector_store %arg6[%c0_11, %c0_12], %12 {strides = array<i32>} : memref<16x128xf32, #tpu.memory_space<vmem>>, vector<16x128xf32>,
    } else {
    }
    %c0 = arith.constant 0 : index
    %c0_1 = arith.constant 0 : index
    %3 = vector.load %arg6[%c0, %c0_1] : memref<16x128xf32, #tpu.memory_space<vmem>>, vector<16x128xf32>
    %c0_2 = arith.constant 0 : index
    %c0_3 = arith.constant 0 : index
    %4 = vector.load %arg3[%c0_2, %c0_3] : memref<16x128xf32, #tpu.memory_space<vmem>>, vector<16x128xf32>
    %c0_4 = arith.constant 0 : index
    %c0_5 = arith.constant 0 : index
    %5 = vector.load %arg4[%c0_4, %c0_5] : memref<128x128xf32, #tpu.memory_space<vmem>>, vector<128x128xf32>
    %cst = arith.constant dense<0.000000e+00> : vector<16x128xf32>
    %6 = tpu.matmul %4, %5, %cst {dimension_numbers = #tpu.dot_dimension_numbers<[1], [0], [0], [1], [0, 0, 1, 1], [], []>} : vector<16x128xf32>, vector<128x128xf32>, vector<16x128xf32> -> vector<16x128xf32>
    %7 = arith.addf %3, %6 : vector<16x128xf32>
    %c0_6 = arith.constant 0 : index
    %c0_7 = arith.constant 0 : index
    %8 = vector.load %arg6[%c0_6, %c0_7] : memref<16x128xf32, #tpu.memory_space<vmem>>, vector<16x128xf32>
    tpu.vector_store %arg6[%c0_6, %c0_7], %7 {strides = array<i32>} : memref<16x128xf32, #tpu.memory_space<vmem>>, vector<16x128xf32>,
    %c0_i32_8 = arith.constant 0 : i32
    %9 = arith.cmpi eq, %arg2, %c0_i32_8 : i32
    %10 = arith.extui %9 : i1 to i32
    %c0_i32_9 = arith.constant 0 : i32
    %11 = arith.cmpi ne, %10, %c0_i32_9 : i32
    scf.if %11 {
      %c0_10 = arith.constant 0 : index
      %c0_11 = arith.constant 0 : index
      %12 = vector.load %arg6[%c0_10, %c0_11] : memref<16x128xf32, #tpu.memory_space<vmem>>, vector<16x128xf32>
      %c0_12 = arith.constant 0 : index
      %c0_13 = arith.constant 0 : index
      %13 = vector.load %arg5[%c0_12, %c0_13] : memref<16x128xf32, #tpu.memory_space<vmem>>, vector<16x128xf32>
      tpu.vector_store %arg5[%c0_12, %c0_13], %12 {strides = array<i32>} : memref<16x128xf32, #tpu.memory_space<vmem>>, vector<16x128xf32>,
    } else {
    }
    return
  }
  func.func @transform_0(%arg0: i32, %arg1: i32, %arg2: i32) -> (i32, i32) {
    %c0_i32 = arith.constant 0 : i32
    return %arg0, %arg2 : i32, i32
  }
  func.func @transform_1(%arg0: i32, %arg1: i32, %arg2: i32) -> (i32, i32) {
    %c0_i32 = arith.constant 0 : i32
    return %arg2, %arg1 : i32, i32
  }
  func.func @transform_2(%arg0: i32, %arg1: i32, %arg2: i32) -> (i32, i32) {
    %c0_i32 = arith.constant 0 : i32
    return %arg0, %arg1 : i32, i32
  }
}

</mosaic_0001>

<bundles_post_ra>
// kernel: z2all_attention_forward.5
= control target key start
LH: loop header
LB: loop body
LE: loop exit
PB: predicated region body
PF: predicated region fallthrough
CT: control target
= control target key end

     0   :  { %v190_v3 = vmov 0.0   ;;  %s320_s1 = inlined_call_operand.vmem [shape: f32[128,256], index: 1, kind: input, shape index: {}]   ;;  %s321_s0 = inlined_call_operand.vmem [shape: f32[16,128], index: 0, kind: input, shape index: {}]   ;;  %s322_s2 = inlined_call_operand.vmem [shape: f32[16,256], index: 2, kind: output, shape index: {}]  }
   0x1   :  { %v56_v0 = vld [vmem:[%s320_s1 + $0xf8] sm:$0xff]  ;;  %v55_v1 = vld [vmem:[%s320_s1 + $0xf0] sm:$0xff]  ;;  %v54_v2 = vld [vmem:[%s320_s1 + $0xe8] sm:$0xff]  ;;  %121 = vmatprep.mubr.f32.mxu0 %v190_v3  ;;  %127 = vmatprep.mubr.f32.mxu1 %v190_v3 }
   0x2   :  { %57 = vmatprep.subr.mxu0 %v56_v0  ;;  %157 = vmatprep.subr.mxu1 %v56_v0  ;;  %v53_v4 = vld [vmem:[%s320_s1 + $0xe0] sm:$0xff]  ;;  %v52_v5 = vld [vmem:[%s320_s1 + $0xd8] sm:$0xff]  ;;  %v51_v6 = vld [vmem:[%s320_s1 + $0xd0] sm:$0xff] }
   0x3   :  { %58 = vmatpush1.msra.mxu0 %v55_v1  ;;  %173 = vmatpush1.msra.mxu1 %v55_v1  ;;  %v50_v7 = vld [vmem:[%s320_s1 + $0xc8] sm:$0xff]  ;;  %v49_v8 = vld [vmem:[%s320_s1 + $0xc0] sm:$0xff]  ;;  %v48_v9 = vld [vmem:[%s320_s1 + $0xb8] sm:$0xff] }
   0x4   :  { %59 = vmatprep.subr.mxu0 %v54_v2  ;;  %158 = vmatprep.subr.mxu1 %v54_v2  ;;  %v47_v10 = vld [vmem:[%s320_s1 + $0xb0] sm:$0xff]  ;;  %v46_v11 = vld [vmem:[%s320_s1 + $0xa8] sm:$0xff]  ;;  %v45_v12 = vld [vmem:[%s320_s1 + $0xa0] sm:$0xff] }
   0x5   :  { %60 = vmatpush1.msra.mxu0 %v53_v4  ;;  %174 = vmatpush1.msra.mxu1 %v53_v4  ;;  %v44_v13 = vld [vmem:[%s320_s1 + $0x98] sm:$0xff]  ;;  %v43_v14 = vld [vmem:[%s320_s1 + $0x90] sm:$0xff]  ;;  %v42_v15 = vld [vmem:[%s320_s1 + $0x88] sm:$0xff] }
   0x6   :  { %61 = vmatprep.subr.mxu0 %v52_v5  ;;  %159 = vmatprep.subr.mxu1 %v52_v5  ;;  %v41_v16 = vld [vmem:[%s320_s1 + $0x80] sm:$0xff]  ;;  %v40_v17 = vld [vmem:[%s320_s1 + $0x78] sm:$0xff]  ;;  %v39_v18 = vld [vmem:[%s320_s1 + $0x70] sm:$0xff] }
   0x7   :  { %62 = vmatpush1.msra.mxu0 %v51_v6  ;;  %175 = vmatpush1.msra.mxu1 %v51_v6  ;;  %v38_v19 = vld [vmem:[%s320_s1 + $0x68] sm:$0xff]  ;;  %v37_v20 = vld [vmem:[%s320_s1 + $0x60] sm:$0xff]  ;;  %v36_v21 = vld [vmem:[%s320_s1 + $0x58] sm:$0xff] }
   0x8   :  { %63 = vmatprep.subr.mxu0 %v50_v7  ;;  %160 = vmatprep.subr.mxu1 %v50_v7  ;;  %v35_v22 = vld [vmem:[%s320_s1 + $0x50] sm:$0xff]  ;;  %v34_v23 = vld [vmem:[%s320_s1 + $0x48] sm:$0xff]  ;;  %v33_v24 = vld [vmem:[%s320_s1 + $0x40] sm:$0xff] }
   0x9   :  { %64 = vmatpush1.msra.mxu0 %v49_v8  ;;  %176 = vmatpush1.msra.mxu1 %v49_v8  ;;  %v32_v25 = vld [vmem:[%s320_s1 + $0x38] sm:$0xff]  ;;  %v31_v26 = vld [vmem:[%s320_s1 + $0x30] sm:$0xff]  ;;  %v30_v27 = vld [vmem:[%s320_s1 + $0x28] sm:$0xff] }
   0xa   :  { %65 = vmatprep.subr.mxu0 %v48_v9  ;;  %161 = vmatprep.subr.mxu1 %v48_v9  ;;  %v29_v28 = vld [vmem:[%s320_s1 + $0x20] sm:$0xff]  ;;  %v28_v29 = vld [vmem:[%s320_s1 + $0x18] sm:$0xff]  ;;  %v27_v30 = vld [vmem:[%s320_s1 + $0x10] sm:$0xff] }
   0xb   :  { %66 = vmatpush1.msra.mxu0 %v47_v10  ;;  %177 = vmatpush1.msra.mxu1 %v47_v10  ;;  %v26_v31 = vld [vmem:[%s320_s1 + $0x8] sm:$0xff]  ;;  %v25_v32 = vld [vmem:[%s320_s1] sm:$0xff] }
   0xc   :  { %67 = vmatprep.subr.mxu0 %v46_v11  ;;  %162 = vmatprep.subr.mxu1 %v46_v11  ;;  %v23_v33 = vld [vmem:[%s321_s0] sm:$0xff]  ;;  %v24_v34 = vld [vmem:[%s321_s0 + $0x8] sm:$0xff] }
   0xd   :  { %68 = vmatpush1.msra.mxu0 %v45_v12  ;;  %178 = vmatpush1.msra.mxu1 %v45_v12 }
   0xe   :  { %69 = vmatprep.subr.mxu0 %v44_v13  ;;  %163 = vmatprep.subr.mxu1 %v44_v13 }
   0xf   :  { %70 = vmatpush1.msra.mxu0 %v43_v14  ;;  %179 = vmatpush1.msra.mxu1 %v43_v14 }
  0x10   :  { %71 = vmatprep.subr.mxu0 %v42_v15  ;;  %164 = vmatprep.subr.mxu1 %v42_v15 }
  0x11   :  { %72 = vmatpush1.msra.mxu0 %v41_v16  ;;  %180 = vmatpush1.msra.mxu1 %v41_v16 }
  0x12   :  { %73 = vmatprep.subr.mxu0 %v40_v17  ;;  %165 = vmatprep.subr.mxu1 %v40_v17 }
  0x13   :  { %74 = vmatpush1.msra.mxu0 %v39_v18  ;;  %181 = vmatpush1.msra.mxu1 %v39_v18 }
  0x14   :  { %75 = vmatprep.subr.mxu0 %v38_v19  ;;  %166 = vmatprep.subr.mxu1 %v38_v19 }
  0x15   :  { %76 = vmatpush1.msra.mxu0 %v37_v20  ;;  %182 = vmatpush1.msra.mxu1 %v37_v20 }
  0x16   :  { %77 = vmatprep.subr.mxu0 %v36_v21  ;;  %167 = vmatprep.subr.mxu1 %v36_v21 }
  0x17   :  { %78 = vmatpush1.msra.mxu0 %v35_v22  ;;  %183 = vmatpush1.msra.mxu1 %v35_v22 }
  0x18   :  { %79 = vmatprep.subr.mxu0 %v34_v23  ;;  %168 = vmatprep.subr.mxu1 %v34_v23 }
  0x19   :  { %80 = vmatpush1.msra.mxu0 %v33_v24  ;;  %184 = vmatpush1.msra.mxu1 %v33_v24 }
  0x1a   :  { %81 = vmatprep.subr.mxu0 %v32_v25  ;;  %169 = vmatprep.subr.mxu1 %v32_v25 }
  0x1b   :  { %82 = vmatpush1.msra.mxu0 %v31_v26  ;;  %185 = vmatpush1.msra.mxu1 %v31_v26 }
  0x1c   :  { %83 = vmatprep.subr.mxu0 %v30_v27  ;;  %170 = vmatprep.subr.mxu1 %v30_v27 }
  0x1d   :  { %84 = vmatpush1.msra.mxu0 %v29_v28  ;;  %186 = vmatpush1.msra.mxu1 %v29_v28 }
  0x1e   :  { %85 = vmatprep.subr.mxu0 %v28_v29  ;;  %171 = vmatprep.subr.mxu1 %v28_v29 }
  0x1f   :  { %86 = vmatpush1.msra.mxu0 %v27_v30  ;;  %187 = vmatpush1.msra.mxu1 %v27_v30 }
  0x20   :  { %87 = vmatprep.subr.mxu0 %v26_v31  ;;  %172 = vmatprep.subr.mxu1 %v26_v31 }
  0x21   :  { %88 = vmatpush1.msra.mxu0 %v25_v32  ;;  %188 = vmatpush1.msra.mxu1 %v25_v32 }
  0x22   :  { %122 = vmatmul.mubr.f32.vlgmr.msra.gmra.mxu0 %v23_v33  ;;  %128 = vmatmul.mubr.f32.vlgmr.msra.gmra.mxu1 %v24_v34 }
  0xe2   :  { %v123_v35 = vpop.f32.mrf.mxu0  ;;  %v129_v36 = vpop.f32.mrf.mxu1 }
  0xe3   :  { %149 = vst [vmem:[%s322_s2] sm:$0xff] %v123_v35  ;;  %151 = vst [vmem:[%s322_s2 + $0x10] sm:$0xff] %v129_v36 }
  0xe4   :  { %v125_v37 = vpop.f32.mrf.mxu0  ;;  %v131_v38 = vpop.f32.mrf.mxu1 }
  0xe5   :  { %150 = vst [vmem:[%s322_s2 + $0x8] sm:$0xff] %v125_v37  ;;  %152 = vst [vmem:[%s322_s2 + $0x18] sm:$0xff] %v131_v38 }

// kernel: z2all_attention_forward.6
= control target key start
LH: loop header
LB: loop body
LE: loop exit
PB: predicated region body
PF: predicated region fallthrough
CT: control target
= control target key end

     0   :  { %v28_v0 = vlaneseq  ;;  %v391_v1 = vmov 1966171168   ;;  %s392_s16 = smov 32   ;;  %s393_s27 = smov 96   ;;  %vm364_vm0 = vcmask 261120   ;;  %vm373_vm1 = vcmask 519168   ;;  %s596_s2 = inlined_call_operand.vmem [shape: f32[8,32], index: 2, kind: input, shape index: {}]   ;;  %s597_s1 = inlined_call_operand.vmem [shape: f32[8,32], index: 1, kind: input, shape index: {}]   ;;  %s598_s0 = inlined_call_operand.vmem [shape: f32[8,4,64], index: 0, kind: input, shape index: {}]   ;;  %s599_s3 = inlined_call_operand.vmem [shape: f32[8,4,64], index: 3, kind: output, shape index: {}]  }
   0x1   :  { %v26_v2 = vunpack.c.l.s4 %v391_v1  ;;  %v73_v4 = vld [vmem:[%s596_s2] sm:$0xff]  ;;  %v478_v54 = vld [vmem:[%s598_s0 + $0x8] sm:$0xf]  ;;  %v486_v56 = vld [vmem:[%s598_s0 + $0xc] sm:$0xf] }
   0x2   :  { %v29_v3 = vshrl.u32 %v28_v0, 7  ;;  %v75_v6 = vcombine.high %v73_v4, %v73_v4  ;;  %v22_v18 = vld [vmem:[%s597_s1] sm:$0xff]  ;;  %v493_v58 = vld [vmem:[%s598_s0 + $0x10] sm:$0xf]  ;;  %v500_v60 = vld [vmem:[%s598_s0 + $0x14] sm:$0xf] }
   0x3   :  { %v27_v5 = vunpack.c.0.s8 %v26_v2  ;;  %v24_v30 = vcombine.high %v22_v18, %v22_v18  ;;  %v461_v50 = vld [vmem:[%s598_s0] sm:$0xf]  ;;  %v470_v52 = vld [vmem:[%s598_s0 + $0x4] sm:$0xf] }
   0x4   :  { %v126_v9 = vsub.s32 0, %v29_v3 }
   0x5   :  { %v30_v7 = vsub.s32 %v27_v5, %v29_v3 }
   0x7   :  { %v82_v8 = vrot.slane %v73_v4, %v30_v7  ;;  %v89_v10 = vrot.slane %v75_v6, %v30_v7  ;;  %v31_v24 = vrot.slane %v22_v18, %v30_v7  ;;  %v38_v35 = vrot.slane %v24_v30, %v30_v7 }
   0x9   :  { %v98_v11 = vrot.slane %v82_v8, %v30_v7  ;;  %v90_v12 = vcombine.high %v82_v8, %v82_v8  ;;  %v105_v13 = vrot.slane %v89_v10, %v30_v7  ;;  %v91_v14 = vcombine.high %v89_v10, %v89_v10  ;;  %v515_v8 = vld [vmem:[%s598_s0 + $0x18] sm:$0xf] }
   0xa   :  { %v39_v29 = vcombine.high %v31_v24, %v31_v24  ;;  %v47_v32 = vrot.slane %v31_v24, %v30_v7  ;;  %v40_v40 = vcombine.high %v38_v35, %v38_v35  ;;  %v54_v42 = vrot.slane %v38_v35, %v30_v7 }
   0xb   :  { %v175_v15 = vrot.slane %v98_v11, %v126_v9  ;;  %v120_v16 = vcombine.high %v98_v11, %v98_v11  ;;  %v119_v17 = vrot.slane %v91_v14, %v30_v7  ;;  %v191_v19 = vrot.slane %v105_v13, %v126_v9 }
   0xc   :  { %v112_v21 = vrot.slane %v90_v12, %v30_v7  ;;  %v121_v26 = vcombine.high %v105_v13, %v105_v13  ;;  %v61_v34 = vrot.slane %v39_v29, %v30_v7  ;;  %v432_v36 = vrot.slane %v47_v32, %v126_v9 }
   0xd   :  { %212 = vrot.lane.b32.xlu0 %v175_v15, %s392_s16  ;;  %v183_v20 = vrot.slane %v120_v16, %v126_v9  ;;  %v195_v22 = vrot.slane %v119_v17, %v126_v9  ;;  %v123_v28 = vcombine.high %v119_v17, %v119_v17  ;;  %v69_v37 = vcombine.high %v47_v32, %v47_v32  ;;  %v525_v16 = vld [vmem:[%s598_s0 + $0x1c] sm:$0xf] }
   0xe   :  { %v122_v23 = vcombine.high %v112_v21, %v112_v21  ;;  %v179_v25 = vrot.slane %v112_v21, %v126_v9  ;;  %v425_v31 = vrot.slane %v121_v26, %v126_v9  ;;  %v436_v38 = vrot.slane %v61_v34, %v126_v9 }
   0xf   :  { %216 = vrot.lane.b32.xlu1 %v183_v20, %s392_s16  ;;  %v428_v33 = vrot.slane %v123_v28, %v126_v9  ;;  %v71_v39 = vcombine.high %v61_v34, %v61_v34  ;;  %v440_v41 = vrot.slane %v69_v37, %v126_v9  ;;  %v68_v44 = vrot.slane %v40_v40, %v30_v7 }
  0x10   :  { %v187_v27 = vrot.slane %v122_v23, %v126_v9  ;;  %v448_v45 = vrot.slane %v54_v42, %v126_v9  ;;  %v70_v46 = vcombine.high %v54_v42, %v54_v42  ;;  %v316_v53 = vmul.f32 %v175_v15, %v461_v50 }
  0x11   :  { %220 = vrot.lane.b32.xlu0 %v191_v19, %s392_s16  ;;  %v444_v43 = vrot.slane %v71_v39, %v126_v9  ;;  %v452_v47 = vrot.slane %v68_v44, %v126_v9  ;;  %v72_v48 = vcombine.high %v68_v44, %v68_v44  ;;  %v317_v55 = vmul.f32 %v179_v25, %v470_v52 }
  0x12   :  { %v456_v49 = vrot.slane %v70_v46, %v126_v9  ;;  %v318_v57 = vmul.f32 %v183_v20, %v478_v54  ;;  %v319_v59 = vmul.f32 %v187_v27, %v486_v56  ;;  %v320_v61 = vmul.f32 %v191_v19, %v493_v58 }
  0x13   :  { %222 = vrot.lane.b32.xlu1 %v195_v22, %s392_s16  ;;  %v465_v51 = vrot.slane %v72_v48, %v126_v9  ;;  %v321_v62 = vmul.f32 %v195_v22, %v500_v60  ;;  %v322_v14 = vmul.f32 %v425_v31, %v515_v8  ;;  %v323_v18 = vmul.f32 %v428_v33, %v525_v16 }
  0x14   :  { %v164_v32 = vmul.f32 %v432_v36, %v461_v50  ;;  %v168_v40 = vmul.f32 %v448_v45, %v493_v58  ;;  %v165_v46 = vmul.f32 %v436_v38, %v470_v52  ;;  %v166_v48 = vmul.f32 %v440_v41, %v478_v54 }
  0x15   :  { %214 = vrot.lane.b32.xlu0 %v179_v25, %s392_s16 }
  0x17   :  { %218 = vrot.lane.b32.xlu1 %v187_v27, %s392_s16 }
  0x19   :  { %224 = vrot.lane.b32.xlu0 %v425_v31, %s392_s16 }
  0x1b   :  { %226 = vrot.lane.b32.xlu1 %v428_v33, %s392_s16 }
  0x1d   :  { %284 = vrot.lane.b32.xlu0 %v432_v36, %s392_s16 }
  0x1f   :  { %286 = vrot.lane.b32.xlu1 %v436_v38, %s392_s16 }
  0x21   :  { %288 = vrot.lane.b32.xlu0 %v440_v41, %s392_s16  ;;  %v169_v41 = vmul.f32 %v452_v47, %v500_v60 }
  0x23   :  { %290 = vrot.lane.b32.xlu1 %v444_v43, %s392_s16 }
  0x25   :  { %292 = vrot.lane.b32.xlu0 %v448_v45, %s392_s16 }
  0x27   :  { %294 = vrot.lane.b32.xlu1 %v452_v47, %s392_s16 }
  0x29   :  { %296 = vrot.lane.b32.xlu0 %v456_v49, %s392_s16 }
  0x2b   :  { %298 = vrot.lane.b32.xlu1 %v465_v51, %s392_s16 }
  0x2d   :  { %332 = vrot.lane.b32.xlu0 %v316_v53, %s392_s16 }
  0x2f   :  { %334 = vrot.lane.b32.xlu1 %v317_v55, %s392_s16 }
  0x31   :  { %336 = vrot.lane.b32.xlu0 %v318_v57, %s392_s16 }
  0x33   :  { %338 = vrot.lane.b32.xlu1 %v319_v59, %s392_s16 }
  0x35   :  { %340 = vrot.lane.b32.xlu0 %v320_v61, %s392_s16 }
  0x37   :  { %342 = vrot.lane.b32.xlu1 %v321_v62, %s392_s16 }
  0x7f   :  { %v213_v63 = vpop.permute.xlu0 %212 }
  0x80   :  { %v236_v0 = vmul.f32 %v213_v63, %v461_v50 }
  0x81   :  { %v217_v1 = vpop.permute.xlu1 %216 }
  0x82   :  { %252 = vrot.lane.b32.xlu0 %v236_v0, %s393_s27  ;;  %v238_v5 = vmul.f32 %v217_v1, %v478_v54  ;;  %v170_v1 = vmul.f32 %v456_v49, %v515_v8 }
  0x83   :  { %v221_v2 = vpop.permute.xlu0 %220 }
  0x84   :  { %v240_v3 = vmul.f32 %v221_v2, %v493_v58 }
  0x85   :  { %v223_v4 = vpop.permute.xlu1 %222 }
  0x86   :  { %260 = vrot.lane.b32.xlu0 %v240_v3, %s393_s27  ;;  %v241_v10 = vmul.f32 %v223_v4, %v500_v60 }
  0x87   :  { %v215_v6 = vpop.permute.xlu0 %214 }
  0x88   :  { %v237_v7 = vmul.f32 %v215_v6, %v470_v52 }
  0x89   :  { %v219_v9 = vpop.permute.xlu1 %218 }
  0x8a   :  { %254 = vrot.lane.b32.xlu1 %v237_v7, %s393_s27  ;;  %256 = vrot.lane.b32.xlu0 %v238_v5, %s393_s27  ;;  %v239_v13 = vmul.f32 %v219_v9, %v486_v56  ;;  %v167_v5 = vmul.f32 %v444_v43, %v486_v56 }
  0x8b   :  { %v225_v11 = vpop.permute.xlu0 %224 }
  0x8c   :  { %v242_v12 = vmul.f32 %v225_v11, %v515_v8 }
  0x8d   :  { %v227_v15 = vpop.permute.xlu1 %226 }
  0x8e   :  { %262 = vrot.lane.b32.xlu1 %v241_v10, %s393_s27  ;;  %264 = vrot.lane.b32.xlu0 %v242_v12, %s393_s27  ;;  %v243_v17 = vmul.f32 %v227_v15, %v525_v16 }
  0x8f   :  { %v285_v19 = vpop.permute.xlu0 %284 }
  0x90   :  { %v308_v31 = vmul.f32 %v285_v19, %v461_v50 }
  0x91   :  { %v287_v21 = vpop.permute.xlu1 %286 }
  0x92   :  { %258 = vrot.lane.b32.xlu1 %v239_v13, %s393_s27  ;;  %344 = vrot.lane.b32.xlu0 %v322_v14, %s392_s16  ;;  %v309_v50 = vmul.f32 %v287_v21, %v470_v52 }
  0x93   :  { %v289_v20 = vpop.permute.xlu0 %288 }
  0x94   :  { %v310_v53 = vmul.f32 %v289_v20, %v478_v54 }
  0x95   :  { %v291_v23 = vpop.permute.xlu1 %290 }
  0x96   :  { %266 = vrot.lane.b32.xlu1 %v243_v17, %s393_s27  ;;  %v311_v2 = vmul.f32 %v291_v23, %v486_v56  ;;  %v171_v56 = vmul.f32 %v465_v51, %v525_v16 }
  0x97   :  { %v293_v22 = vpop.permute.xlu0 %292 }
  0x98   :  { %v312_v35 = vmul.f32 %v293_v22, %v493_v58 }
  0x99   :  { %v295_v25 = vpop.permute.xlu1 %294 }
  0x9a   :  { %346 = vrot.lane.b32.xlu1 %v323_v18, %s392_s16  ;;  %v313_v58 = vmul.f32 %v295_v25, %v500_v60 }
  0x9b   :  { %v297_v24 = vpop.permute.xlu0 %296 }
  0x9c   :  { %v314_v49 = vmul.f32 %v297_v24, %v515_v8 }
  0x9d   :  { %v299_v27 = vpop.permute.xlu1 %298 }
  0x9e   :  { %v315_v8 = vmul.f32 %v299_v27, %v525_v16 }
  0x9f   :  { %v333_v26 = vpop.permute.xlu0 %332 }
  0xa0   :  { %v356_v37 = vadd.f32 %v333_v26, %v308_v31 }
  0xa1   :  { %v335_v29 = vpop.permute.xlu1 %334 }
  0xa2   :  { %v357_v61 = vadd.f32 %v335_v29, %v309_v50 }
  0xa3   :  { %v337_v28 = vpop.permute.xlu0 %336 }
  0xa4   :  { %v358_v52 = vadd.f32 %v337_v28, %v310_v53 }
  0xa5   :  { %v339_v33 = vpop.permute.xlu1 %338 }
  0xa6   :  { %v359_v11 = vadd.f32 %v339_v33, %v311_v2 }
  0xa7   :  { %v341_v30 = vpop.permute.xlu0 %340 }
  0xa8   :  { %v360_v45 = vadd.f32 %v341_v30, %v312_v35 }
  0xa9   :  { %v343_v44 = vpop.permute.xlu1 %342 }
  0xaa   :  { %v361_v3 = vadd.f32 %v343_v44, %v313_v58 }
  0xf4   :  { %v253_v34 = vpop.permute.xlu0 %252 }
  0xf5   :  { %v276_v39 = vsub.f32 %v164_v32, %v253_v34 }
  0xf7   :  { %v365_v42 = vsel %vm364_vm0, %v276_v39, %v356_v37 }
  0xf8   :  { %374 = vst.msk [vmem:[%s599_s3] sm:$0xf] %vm373_vm1, %v365_v42  ;;  %v261_v36 = vpop.permute.xlu0 %260 }
  0xf9   :  { %v280_v55 = vsub.f32 %v168_v40, %v261_v36 }
  0xfb   :  { %v369_v57 = vsel %vm364_vm0, %v280_v55, %v360_v45 }
  0xfc   :  { %378 = vst.msk [vmem:[%s599_s3 + $0x10] sm:$0xf] %vm373_vm1, %v369_v57  ;;  %v255_v59 = vpop.permute.xlu1 %254  ;;  %v257_v38 = vpop.permute.xlu0 %256 }
  0xfd   :  { %v277_v62 = vsub.f32 %v165_v46, %v255_v59  ;;  %v278_v54 = vsub.f32 %v166_v48, %v257_v38 }
  0xff   :  { %v366_v63 = vsel %vm364_vm0, %v277_v62, %v357_v61  ;;  %v367_v0 = vsel %vm364_vm0, %v278_v54, %v358_v52 }
 0x100   :  { %375 = vst.msk [vmem:[%s599_s3 + $0x4] sm:$0xf] %vm373_vm1, %v366_v63  ;;  %376 = vst.msk [vmem:[%s599_s3 + $0x8] sm:$0xf] %vm373_vm1, %v367_v0  ;;  %v263_v47 = vpop.permute.xlu1 %262  ;;  %v265_v60 = vpop.permute.xlu0 %264 }
 0x101   :  { %v281_v4 = vsub.f32 %v169_v41, %v263_v47  ;;  %v282_v7 = vsub.f32 %v170_v1, %v265_v60 }
 0x103   :  { %v370_v6 = vsel %vm364_vm0, %v281_v4, %v361_v3 }
 0x104   :  { %379 = vst.msk [vmem:[%s599_s3 + $0x14] sm:$0xf] %vm373_vm1, %v370_v6  ;;  %v259_v9 = vpop.permute.xlu1 %258  ;;  %v345_v10 = vpop.permute.xlu0 %344 }
 0x105   :  { %v279_v12 = vsub.f32 %v167_v5, %v259_v9  ;;  %v362_v13 = vadd.f32 %v345_v10, %v314_v49 }
 0x107   :  { %v368_v14 = vsel %vm364_vm0, %v279_v12, %v359_v11  ;;  %v371_v15 = vsel %vm364_vm0, %v282_v7, %v362_v13 }
 0x108   :  { %377 = vst.msk [vmem:[%s599_s3 + $0xc] sm:$0xf] %vm373_vm1, %v368_v14  ;;  %380 = vst.msk [vmem:[%s599_s3 + $0x18] sm:$0xf] %vm373_vm1, %v371_v15  ;;  %v267_v43 = vpop.permute.xlu1 %266 }
 0x109   :  { %v283_v18 = vsub.f32 %v171_v56, %v267_v43 }
 0x10c   :  { %v347_v17 = vpop.permute.xlu1 %346 }
 0x10d   :  { %v363_v19 = vadd.f32 %v347_v17, %v315_v8 }
 0x10f   :  { %v372_v20 = vsel %vm364_vm0, %v283_v18, %v363_v19 }
 0x110   :  { %381 = vst.msk [vmem:[%s599_s3 + $0x1c] sm:$0xf] %vm373_vm1, %v372_v20 }

// kernel: z2all_attention_forward.7
= control target key start
LH: loop header
LB: loop body
LE: loop exit
PB: predicated region body
PF: predicated region fallthrough
CT: control target
= control target key end

     0   :  { %v28_v0 = vlaneseq  ;;  %v391_v1 = vmov 1966171168   ;;  %s392_s16 = smov 32   ;;  %s393_s27 = smov 96   ;;  %vm364_vm0 = vcmask 261120   ;;  %vm373_vm1 = vcmask 517120   ;;  %s596_s2 = inlined_call_operand.vmem [shape: f32[8,32], index: 2, kind: input, shape index: {}]   ;;  %s597_s1 = inlined_call_operand.vmem [shape: f32[8,32], index: 1, kind: input, shape index: {}]   ;;  %s598_s0 = inlined_call_operand.vmem [shape: f32[8,2,64], index: 0, kind: input, shape index: {}]   ;;  %s599_s3 = inlined_call_operand.vmem [shape: f32[8,2,64], index: 3, kind: output, shape index: {}]  }
   0x1   :  { %v26_v2 = vunpack.c.l.s4 %v391_v1  ;;  %v73_v4 = vld [vmem:[%s596_s2] sm:$0xff]  ;;  %v493_v58 = vld [vmem:[%s598_s0 + $0x8] sm:$0x3]  ;;  %v500_v60 = vld [vmem:[%s598_s0 + $0xa] sm:$0x3] }
   0x2   :  { %v29_v3 = vshrl.u32 %v28_v0, 7  ;;  %v75_v6 = vcombine.high %v73_v4, %v73_v4  ;;  %v22_v18 = vld [vmem:[%s597_s1] sm:$0xff] }
   0x3   :  { %v27_v5 = vunpack.c.0.s8 %v26_v2  ;;  %v24_v30 = vcombine.high %v22_v18, %v22_v18  ;;  %v461_v50 = vld [vmem:[%s598_s0] sm:$0x3]  ;;  %v470_v52 = vld [vmem:[%s598_s0 + $0x2] sm:$0x3]  ;;  %v478_v54 = vld [vmem:[%s598_s0 + $0x4] sm:$0x3] }
   0x4   :  { %v126_v9 = vsub.s32 0, %v29_v3  ;;  %v486_v56 = vld [vmem:[%s598_s0 + $0x6] sm:$0x3] }
   0x5   :  { %v30_v7 = vsub.s32 %v27_v5, %v29_v3 }
   0x7   :  { %v82_v8 = vrot.slane %v73_v4, %v30_v7  ;;  %v89_v10 = vrot.slane %v75_v6, %v30_v7  ;;  %v31_v24 = vrot.slane %v22_v18, %v30_v7  ;;  %v38_v35 = vrot.slane %v24_v30, %v30_v7 }
   0x9   :  { %v98_v11 = vrot.slane %v82_v8, %v30_v7  ;;  %v90_v12 = vcombine.high %v82_v8, %v82_v8  ;;  %v105_v13 = vrot.slane %v89_v10, %v30_v7  ;;  %v91_v14 = vcombine.high %v89_v10, %v89_v10  ;;  %v515_v8 = vld [vmem:[%s598_s0 + $0xc] sm:$0x3] }
   0xa   :  { %v39_v29 = vcombine.high %v31_v24, %v31_v24  ;;  %v47_v32 = vrot.slane %v31_v24, %v30_v7  ;;  %v40_v40 = vcombine.high %v38_v35, %v38_v35  ;;  %v54_v42 = vrot.slane %v38_v35, %v30_v7 }
   0xb   :  { %v175_v15 = vrot.slane %v98_v11, %v126_v9  ;;  %v120_v16 = vcombine.high %v98_v11, %v98_v11  ;;  %v119_v17 = vrot.slane %v91_v14, %v30_v7  ;;  %v191_v19 = vrot.slane %v105_v13, %v126_v9 }
   0xc   :  { %v112_v21 = vrot.slane %v90_v12, %v30_v7  ;;  %v121_v26 = vcombine.high %v105_v13, %v105_v13  ;;  %v61_v34 = vrot.slane %v39_v29, %v30_v7  ;;  %v432_v36 = vrot.slane %v47_v32, %v126_v9 }
   0xd   :  { %212 = vrot.lane.b32.xlu0 %v175_v15, %s392_s16  ;;  %v183_v20 = vrot.slane %v120_v16, %v126_v9  ;;  %v195_v22 = vrot.slane %v119_v17, %v126_v9  ;;  %v123_v28 = vcombine.high %v119_v17, %v119_v17  ;;  %v69_v37 = vcombine.high %v47_v32, %v47_v32  ;;  %v525_v16 = vld [vmem:[%s598_s0 + $0xe] sm:$0x3] }
   0xe   :  { %v122_v23 = vcombine.high %v112_v21, %v112_v21  ;;  %v179_v25 = vrot.slane %v112_v21, %v126_v9  ;;  %v425_v31 = vrot.slane %v121_v26, %v126_v9  ;;  %v436_v38 = vrot.slane %v61_v34, %v126_v9 }
   0xf   :  { %216 = vrot.lane.b32.xlu1 %v183_v20, %s392_s16  ;;  %v428_v33 = vrot.slane %v123_v28, %v126_v9  ;;  %v71_v39 = vcombine.high %v61_v34, %v61_v34  ;;  %v440_v41 = vrot.slane %v69_v37, %v126_v9  ;;  %v68_v44 = vrot.slane %v40_v40, %v30_v7 }
  0x10   :  { %v187_v27 = vrot.slane %v122_v23, %v126_v9  ;;  %v448_v45 = vrot.slane %v54_v42, %v126_v9  ;;  %v70_v46 = vcombine.high %v54_v42, %v54_v42  ;;  %v316_v53 = vmul.f32 %v175_v15, %v461_v50 }
  0x11   :  { %220 = vrot.lane.b32.xlu0 %v191_v19, %s392_s16  ;;  %v444_v43 = vrot.slane %v71_v39, %v126_v9  ;;  %v452_v47 = vrot.slane %v68_v44, %v126_v9  ;;  %v72_v48 = vcombine.high %v68_v44, %v68_v44  ;;  %v317_v55 = vmul.f32 %v179_v25, %v470_v52 }
  0x12   :  { %v456_v49 = vrot.slane %v70_v46, %v126_v9  ;;  %v318_v57 = vmul.f32 %v183_v20, %v478_v54  ;;  %v319_v59 = vmul.f32 %v187_v27, %v486_v56  ;;  %v320_v61 = vmul.f32 %v191_v19, %v493_v58 }
  0x13   :  { %222 = vrot.lane.b32.xlu1 %v195_v22, %s392_s16  ;;  %v465_v51 = vrot.slane %v72_v48, %v126_v9  ;;  %v321_v62 = vmul.f32 %v195_v22, %v500_v60  ;;  %v322_v14 = vmul.f32 %v425_v31, %v515_v8  ;;  %v323_v18 = vmul.f32 %v428_v33, %v525_v16 }
  0x14   :  { %v164_v32 = vmul.f32 %v432_v36, %v461_v50  ;;  %v168_v40 = vmul.f32 %v448_v45, %v493_v58  ;;  %v165_v46 = vmul.f32 %v436_v38, %v470_v52  ;;  %v166_v48 = vmul.f32 %v440_v41, %v478_v54 }
  0x15   :  { %214 = vrot.lane.b32.xlu0 %v179_v25, %s392_s16 }
  0x17   :  { %218 = vrot.lane.b32.xlu1 %v187_v27, %s392_s16 }
  0x19   :  { %224 = vrot.lane.b32.xlu0 %v425_v31, %s392_s16 }
  0x1b   :  { %226 = vrot.lane.b32.xlu1 %v428_v33, %s392_s16 }
  0x1d   :  { %284 = vrot.lane.b32.xlu0 %v432_v36, %s392_s16 }
  0x1f   :  { %286 = vrot.lane.b32.xlu1 %v436_v38, %s392_s16 }
  0x21   :  { %288 = vrot.lane.b32.xlu0 %v440_v41, %s392_s16  ;;  %v169_v41 = vmul.f32 %v452_v47, %v500_v60 }
  0x23   :  { %290 = vrot.lane.b32.xlu1 %v444_v43, %s392_s16 }
  0x25   :  { %292 = vrot.lane.b32.xlu0 %v448_v45, %s392_s16 }
  0x27   :  { %294 = vrot.lane.b32.xlu1 %v452_v47, %s392_s16 }
  0x29   :  { %296 = vrot.lane.b32.xlu0 %v456_v49, %s392_s16 }
  0x2b   :  { %298 = vrot.lane.b32.xlu1 %v465_v51, %s392_s16 }
  0x2d   :  { %332 = vrot.lane.b32.xlu0 %v316_v53, %s392_s16 }
  0x2f   :  { %334 = vrot.lane.b32.xlu1 %v317_v55, %s392_s16 }
  0x31   :  { %336 = vrot.lane.b32.xlu0 %v318_v57, %s392_s16 }
  0x33   :  { %338 = vrot.lane.b32.xlu1 %v319_v59, %s392_s16 }
  0x35   :  { %340 = vrot.lane.b32.xlu0 %v320_v61, %s392_s16 }
  0x37   :  { %342 = vrot.lane.b32.xlu1 %v321_v62, %s392_s16 }
  0x7f   :  { %v213_v63 = vpop.permute.xlu0 %212 }
  0x80   :  { %v236_v0 = vmul.f32 %v213_v63, %v461_v50 }
  0x81   :  { %v217_v1 = vpop.permute.xlu1 %216 }
  0x82   :  { %252 = vrot.lane.b32.xlu0 %v236_v0, %s393_s27  ;;  %v238_v5 = vmul.f32 %v217_v1, %v478_v54  ;;  %v170_v1 = vmul.f32 %v456_v49, %v515_v8 }
  0x83   :  { %v221_v2 = vpop.permute.xlu0 %220 }
  0x84   :  { %v240_v3 = vmul.f32 %v221_v2, %v493_v58 }
  0x85   :  { %v223_v4 = vpop.permute.xlu1 %222 }
  0x86   :  { %260 = vrot.lane.b32.xlu0 %v240_v3, %s393_s27  ;;  %v241_v10 = vmul.f32 %v223_v4, %v500_v60 }
  0x87   :  { %v215_v6 = vpop.permute.xlu0 %214 }
  0x88   :  { %v237_v7 = vmul.f32 %v215_v6, %v470_v52 }
  0x89   :  { %v219_v9 = vpop.permute.xlu1 %218 }
  0x8a   :  { %254 = vrot.lane.b32.xlu1 %v237_v7, %s393_s27  ;;  %256 = vrot.lane.b32.xlu0 %v238_v5, %s393_s27  ;;  %v239_v13 = vmul.f32 %v219_v9, %v486_v56  ;;  %v167_v5 = vmul.f32 %v444_v43, %v486_v56 }
  0x8b   :  { %v225_v11 = vpop.permute.xlu0 %224 }
  0x8c   :  { %v242_v12 = vmul.f32 %v225_v11, %v515_v8 }
  0x8d   :  { %v227_v15 = vpop.permute.xlu1 %226 }
  0x8e   :  { %262 = vrot.lane.b32.xlu1 %v241_v10, %s393_s27  ;;  %264 = vrot.lane.b32.xlu0 %v242_v12, %s393_s27  ;;  %v243_v17 = vmul.f32 %v227_v15, %v525_v16 }
  0x8f   :  { %v285_v19 = vpop.permute.xlu0 %284 }
  0x90   :  { %v308_v31 = vmul.f32 %v285_v19, %v461_v50 }
  0x91   :  { %v287_v21 = vpop.permute.xlu1 %286 }
  0x92   :  { %258 = vrot.lane.b32.xlu1 %v239_v13, %s393_s27  ;;  %344 = vrot.lane.b32.xlu0 %v322_v14, %s392_s16  ;;  %v309_v50 = vmul.f32 %v287_v21, %v470_v52 }
  0x93   :  { %v289_v20 = vpop.permute.xlu0 %288 }
  0x94   :  { %v310_v53 = vmul.f32 %v289_v20, %v478_v54 }
  0x95   :  { %v291_v23 = vpop.permute.xlu1 %290 }
  0x96   :  { %266 = vrot.lane.b32.xlu1 %v243_v17, %s393_s27  ;;  %v311_v2 = vmul.f32 %v291_v23, %v486_v56  ;;  %v171_v56 = vmul.f32 %v465_v51, %v525_v16 }
  0x97   :  { %v293_v22 = vpop.permute.xlu0 %292 }
  0x98   :  { %v312_v35 = vmul.f32 %v293_v22, %v493_v58 }
  0x99   :  { %v295_v25 = vpop.permute.xlu1 %294 }
  0x9a   :  { %346 = vrot.lane.b32.xlu1 %v323_v18, %s392_s16  ;;  %v313_v58 = vmul.f32 %v295_v25, %v500_v60 }
  0x9b   :  { %v297_v24 = vpop.permute.xlu0 %296 }
  0x9c   :  { %v314_v49 = vmul.f32 %v297_v24, %v515_v8 }
  0x9d   :  { %v299_v27 = vpop.permute.xlu1 %298 }
  0x9e   :  { %v315_v8 = vmul.f32 %v299_v27, %v525_v16 }
  0x9f   :  { %v333_v26 = vpop.permute.xlu0 %332 }
  0xa0   :  { %v356_v37 = vadd.f32 %v333_v26, %v308_v31 }
  0xa1   :  { %v335_v29 = vpop.permute.xlu1 %334 }
  0xa2   :  { %v357_v61 = vadd.f32 %v335_v29, %v309_v50 }
  0xa3   :  { %v337_v28 = vpop.permute.xlu0 %336 }
  0xa4   :  { %v358_v52 = vadd.f32 %v337_v28, %v310_v53 }
  0xa5   :  { %v339_v33 = vpop.permute.xlu1 %338 }
  0xa6   :  { %v359_v11 = vadd.f32 %v339_v33, %v311_v2 }
  0xa7   :  { %v341_v30 = vpop.permute.xlu0 %340 }
  0xa8   :  { %v360_v45 = vadd.f32 %v341_v30, %v312_v35 }
  0xa9   :  { %v343_v44 = vpop.permute.xlu1 %342 }
  0xaa   :  { %v361_v3 = vadd.f32 %v343_v44, %v313_v58 }
  0xf4   :  { %v253_v34 = vpop.permute.xlu0 %252 }
  0xf5   :  { %v276_v39 = vsub.f32 %v164_v32, %v253_v34 }
  0xf7   :  { %v365_v42 = vsel %vm364_vm0, %v276_v39, %v356_v37 }
  0xf8   :  { %374 = vst.msk [vmem:[%s599_s3] sm:$0x3] %vm373_vm1, %v365_v42  ;;  %v261_v36 = vpop.permute.xlu0 %260 }
  0xf9   :  { %v280_v55 = vsub.f32 %v168_v40, %v261_v36 }
  0xfb   :  { %v369_v57 = vsel %vm364_vm0, %v280_v55, %v360_v45 }
  0xfc   :  { %378 = vst.msk [vmem:[%s599_s3 + $0x8] sm:$0x3] %vm373_vm1, %v369_v57  ;;  %v255_v59 = vpop.permute.xlu1 %254  ;;  %v257_v38 = vpop.permute.xlu0 %256 }
  0xfd   :  { %v277_v62 = vsub.f32 %v165_v46, %v255_v59  ;;  %v278_v54 = vsub.f32 %v166_v48, %v257_v38 }
  0xff   :  { %v366_v63 = vsel %vm364_vm0, %v277_v62, %v357_v61  ;;  %v367_v0 = vsel %vm364_vm0, %v278_v54, %v358_v52 }
 0x100   :  { %375 = vst.msk [vmem:[%s599_s3 + $0x2] sm:$0x3] %vm373_vm1, %v366_v63  ;;  %376 = vst.msk [vmem:[%s599_s3 + $0x4] sm:$0x3] %vm373_vm1, %v367_v0  ;;  %v263_v47 = vpop.permute.xlu1 %262  ;;  %v265_v60 = vpop.permute.xlu0 %264 }
 0x101   :  { %v281_v4 = vsub.f32 %v169_v41, %v263_v47  ;;  %v282_v7 = vsub.f32 %v170_v1, %v265_v60 }
 0x103   :  { %v370_v6 = vsel %vm364_vm0, %v281_v4, %v361_v3 }
 0x104   :  { %379 = vst.msk [vmem:[%s599_s3 + $0xa] sm:$0x3] %vm373_vm1, %v370_v6  ;;  %v259_v9 = vpop.permute.xlu1 %258  ;;  %v345_v10 = vpop.permute.xlu0 %344 }
 0x105   :  { %v279_v12 = vsub.f32 %v167_v5, %v259_v9  ;;  %v362_v13 = vadd.f32 %v345_v10, %v314_v49 }
 0x107   :  { %v368_v14 = vsel %vm364_vm0, %v279_v12, %v359_v11  ;;  %v371_v15 = vsel %vm364_vm0, %v282_v7, %v362_v13 }
 0x108   :  { %377 = vst.msk [vmem:[%s599_s3 + $0x6] sm:$0x3] %vm373_vm1, %v368_v14  ;;  %380 = vst.msk [vmem:[%s599_s3 + $0xc] sm:$0x3] %vm373_vm1, %v371_v15  ;;  %v267_v43 = vpop.permute.xlu1 %266 }
 0x109   :  { %v283_v18 = vsub.f32 %v171_v56, %v267_v43 }
 0x10c   :  { %v347_v17 = vpop.permute.xlu1 %346 }
 0x10d   :  { %v363_v19 = vadd.f32 %v347_v17, %v315_v8 }
 0x10f   :  { %v372_v20 = vsel %vm364_vm0, %v283_v18, %v363_v19 }
 0x110   :  { %381 = vst.msk [vmem:[%s599_s3 + $0xe] sm:$0x3] %vm373_vm1, %v372_v20 }

// kernel: z2all_attention_forward.8
= control target key start
LH: loop header
LB: loop body
LE: loop exit
PB: predicated region body
PF: predicated region fallthrough
CT: control target
= control target key end

     0   :  { %s708_s12 = smov 0   ;;  %s710_s13 = smov 0   ;;  %s765_s0 = inlined_call_operand.vmem [shape: f32[4,8,64], index: 0, kind: input, shape index: {}]   ;;  %s766_s1 = inlined_call_operand.vmem [shape: f32[4,8,64], index: 1, kind: input, shape index: {}]   ;;  %s767_s2 = inlined_call_operand.vmem [shape: f32[4,8,64], index: 2, kind: input, shape index: {}]   ;;  %s768_s3 = inlined_call_operand.vmem [shape: f32[4,8,64], index: 3, kind: output, shape index: {}]  }
   0x1   :  { %s712_s14 = smov 0  }
   0x2 LB: > { %s32_s15 = sadd.s32 1, %s678_s13  ;;  %p600_p0 = scmp.ge.s32.totalorder %s682_s14, 1  ;;  %s682_s14 = sphi %s712_s14, %s13_s14   ;;  %s678_s13 = sphi %s710_s13, %s770_s13   ;;  %s674_s12 = sphi %s708_s12, %s769_s12  }
   0x3   : > { %p34_p1 = scmp.ge.s32.totalorder %s32_s15, 4  ;;  %p190_p2 = scmp.lt.s32.totalorder %s682_s14, 5 }
   0x5   : > { %s772_s15 = smov (%p34_p1, %s32_s15), 0  ;;  %p191_p3 = pnand %p600_p0, %p190_p2 }
   0x6   : > { %p232_p4 = scmp.lt.s32.totalorder (!%p191_p3), %s674_s12, 3 }
   0x7   : > { %194 = sbr.rel (%p191_p3) target bundleno = 790 (0x316), region = 32 }
   0xc   : > { %vm267_vm0 = vcmask 523264   ;;  %v684_v0 = vmov 0.0   ;;  %vm685_vm1 = vmmov 0   ;;  %s774_s12 = smov (!%p232_p4, %s674_s12), 3  ;;  %vm264_vm2 = vcmask 7168  }
   0xd   : > { %614 = vmatprep.subr.mxu0 %v684_v0  ;;  %268 = vst.msk [vmem:[#allocation4] sm:$0xff] %vm267_vm0, %v684_v0  ;;  %616 = vmatprep.mubr.msk.f32.mxu0 %vm685_vm1, %v684_v0  ;;  %s727_s16 = sshll.u32 %s774_s12, 3  ;;  %v686_v3 = vmov -inf   ;;  %v357_v4 = vlaneseq  ;;  %vm368_vm4 = vcmask 64512   ;;  %v687_v12 = vmov 0  }
   0xe   : > { %619 = vmatprep.subr.mxu1 %v684_v0  ;;  %621 = vmatprep.mubr.msk.f32.mxu1 %vm685_vm1, %v684_v0  ;;  %s245_s19 = scalar_lea.vmem %s766_s1, %s727_s16  ;;  %s238_s22 = scalar_lea.vmem %s765_s0, %s727_s16  ;;  %265 = vst.msk [vmem:[#allocation2] sm:$0xff] %vm264_vm2, %v686_v3  ;;  %266 = vst.msk [vmem:[#allocation3] sm:$0xff] %vm264_vm2, %v684_v0 }
   0xf   : > { %v277_v1 = vld [vmem:[%s245_s19] sm:$0xff]  ;;  %v358_v5 = vshrl.u32 %v357_v4, 7  ;;  %v362_v6 = vand.u32 127, %v357_v4  ;;  %652 = vset.pattern.permute.xlu0 %v687_v12  ;;  %653 = vset.pattern.permute.xlu1 %v687_v12  ;;  %s252_s25 = scalar_lea.vmem %s767_s2, %s727_s16  ;;  %s259_s28 = scalar_lea.vmem %s768_s3, %s727_s16 }
  0x10   : > { %615 = vmatpush3.xpose.msk.msra.mxu0 %vm267_vm0, %v277_v1  ;;  %v276_v2 = vld [vmem:[%s238_s22] sm:$0xff] }
  0x11   : > { %vm365_vm3 = vcmp.ge.s32.totalorder %v358_v5, %v362_v6  ;;  %v278_v17 = vld [vmem:[%s252_s25] sm:$0xff] }
  0x12   : > { %620 = vmatpush3.msra.mxu1 %v278_v17 }
  0x13   : > { %617 = vmatmul.mubr.msk.f32.vlgmr.msra.gmra.mxu0 %vm267_vm0, %v276_v2 }
  0x14   : > { %v392_v33 = vld [vmem:[#allocation4] sm:$0xff] }
  0x15   : > { %v367_v13 = vld [vmem:[#allocation2] sm:$0xff]  ;;  %v384_v25 = vld [vmem:[#allocation3] sm:$0xff] }
  0xd3   : > { %v352_v7 = vpop.f32.mrf.mxu0 }
  0xd4   : > { %v356_v8 = vmul.f32 0.125, %v352_v7 }
  0xd5   : > { %v618_v9 = vpop.f32.mrf.mxu0 }
  0xd6   : > { %v366_v10 = vsel %vm365_vm3, %v356_v8, -2.3819763e+38 }
  0xd7   : > { %v369_v11 = vsel %vm368_vm4, %v366_v10, -inf }
  0xd8   : > { %370 = vmax.xlane.f32.xlu0 %v369_v11 }
 0x161   : > { %v371_v14 = vpop.xlane.xlu0 %370 }
 0x162   : > { %v372_v15 = vmax.f32 %v367_v13, %v371_v14 }
 0x164   : > { %v373_v16 = vsub.f32 %v367_v13, %v372_v15  ;;  %474 = vst.msk [vmem:[#allocation2] sm:$0xff] %vm264_vm2, %v372_v15  ;;  %378 = vperm.xlu0 %652, %v372_v15  }
 0x166   : > { %v374_v23 = vmul.f32 1.442695, %v373_v16 }
 0x1df   : > { %v379_v18 = vpop.permute.xlu0 %378 }
 0x1e0   : > { %v381_v19 = vsub.f32 %v366_v10, %v379_v18 }
 0x1e2   : > { %v382_v20 = vmul.f32 1.442695, %v381_v19 }
 0x1e4   : > { %654 = vpow2.f32 %v382_v20 }
 0x1e5   : > { %656 = vpow2.f32 %v374_v23 }
 0x1f1   : > { %v655_v21 = vpop.eup %654 }
 0x1f2   : > { %622 = vmatmul.mubr.msk.f32.vlgmr.msra.gmra.mxu1 %vm368_vm4, %v655_v21  ;;  %v386_v22 = vsel %vm368_vm4, %v655_v21, 0.0  ;;  %v657_v24 = vpop.eup %656 }
 0x1f3   : > { %387 = vadd.xlane.f32.xlu1 %v386_v22  ;;  %v385_v26 = vmul.f32 %v657_v24, %v384_v25 }
 0x27c   : > { %v388_v27 = vpop.xlane.xlu1 %387 }
 0x27d   : > { %v389_v28 = vadd.f32 %v388_v27, %v385_v26 }
 0x27f   : > { %391 = vst.msk [vmem:[#allocation3] sm:$0xff] %vm264_vm2, %v389_v28 }
 0x286   : > { %v479_v29 = vld [vmem:[#allocation3] sm:$0xff] }
 0x287   : > { %482 = vperm.xlu1 %653, %v479_v29  }
 0x28b   : > { %395 = vperm.xlu1 %653, %v657_v24  }
 0x2b2   : > { %v468_v30 = vpop.f32.mrf.mxu1 }
 0x2b4   : > { %v623_v31 = vpop.f32.mrf.mxu1 }
 0x302   : > { %v483_v32 = vpop.permute.xlu1 %482 }
 0x303   : > { %658 = vrcp.f32 %v483_v32 }
 0x306   : > { %v396_v34 = vpop.permute.xlu1 %395 }
 0x307   : > { %v398_v35 = vmul.f32 %v396_v34, %v392_v33 }
 0x309   : > { %v472_v36 = vadd.f32 %v468_v30, %v398_v35 }
 0x30b   : > { %473 = vst.msk [vmem:[#allocation4] sm:$0xff] %vm267_vm0, %v472_v36 }
 0x310   : > { %v659_v37 = vpop.eup %658 }
 0x312   : > { %v478_v38 = vld [vmem:[#allocation4] sm:$0xff] }
 0x313   : > { %v486_v39 = vmul.f32 %v659_v37, %v478_v38 }
 0x315   : > { %488 = vst.msk [vmem:[%s259_s28] sm:$0xff] %vm267_vm0, %v486_v39 }
 0x316 PF: > { %s13_s14 = sadd.s32 1, %s682_s14   ;;  %s769_s12 = smov %s678_s13 }
 0x317   : > { %p10_p5 = scmp.ge.s32.totalorder %s13_s14, 6   ;;  %s770_s13 = smov %s772_s15 }
 0x319   :  { %12 = sbr.rel (!%p10_p5) target bundleno = 2 (0x2), region = 80 }

// kernel: z2all_attention_forward.9
= control target key start
LH: loop header
LB: loop body
LE: loop exit
PB: predicated region body
PF: predicated region fallthrough
CT: control target
= control target key end

     0   :  { %s293_s0 = inlined_call_operand.vmem [shape: f32[16,128], index: 0, kind: input, shape index: {}]   ;;  %s294_s1 = inlined_call_operand.vmem [shape: f32[128,128], index: 1, kind: input, shape index: {}]   ;;  %s295_s2 = inlined_call_operand.hbm [shape: f32[16,128], index: 2, kind: output, shape index: {}]  }
   0x1   :  { %v37_v0 = vld [vmem:[%s294_s1 + $0x78] sm:$0xff]  ;;  %v36_v1 = vld [vmem:[%s294_s1 + $0x70] sm:$0xff]  ;;  %v35_v2 = vld [vmem:[%s294_s1 + $0x68] sm:$0xff] }
   0x2   :  { %158 = vmatprep.subr.mxu0 %v37_v0  ;;  %v34_v3 = vld [vmem:[%s294_s1 + $0x60] sm:$0xff]  ;;  %v33_v5 = vld [vmem:[%s294_s1 + $0x58] sm:$0xff] }
   0x3   :  { %159 = vmatpush3.msra.mxu0 %v37_v0  ;;  %v20_v4 = vld [vmem:[%s293_s0] sm:$0xff] }
   0x4   :  { %160 = vmatprep.subr.mxu0 %v36_v1  ;;  %190 = vmatprep.mubr.f32.mxu0 %v20_v4 }
   0x5   :  { %161 = vmatpush3.msra.mxu0 %v36_v1 }
   0x6   :  { %162 = vmatprep.subr.mxu0 %v35_v2 }
   0x7   :  { %163 = vmatpush3.msra.mxu0 %v35_v2 }
   0x8   :  { %7 = vsyncpa [#allocation4], 0  ;;  %164 = vmatprep.subr.mxu0 %v34_v3  ;;  %v32_v6 = vld [vmem:[%s294_s1 + $0x50] sm:$0xff]  ;;  %v31_v7 = vld [vmem:[%s294_s1 + $0x48] sm:$0xff]  ;;  %s218_s17 = smov [#allocation3]  }
   0x9   :  { %165 = vmatpush3.msra.mxu0 %v34_v3  ;;  %v30_v8 = vld [vmem:[%s294_s1 + $0x40] sm:$0xff]  ;;  %v29_v9 = vld [vmem:[%s294_s1 + $0x38] sm:$0xff]  ;;  %v28_v10 = vld [vmem:[%s294_s1 + $0x30] sm:$0xff]  ;;  %s129_s18 = sshll.u32 %s218_s17, 4  ;;  %s130_s18 = int_to_ptr.vmem [resolvable:$true] %s129_s18 }
   0xa   :  { %166 = vmatprep.subr.mxu0 %v33_v5  ;;  %v27_v11 = vld [vmem:[%s294_s1 + $0x28] sm:$0xff]  ;;  %v26_v12 = vld [vmem:[%s294_s1 + $0x20] sm:$0xff]  ;;  %v25_v13 = vld [vmem:[%s294_s1 + $0x18] sm:$0xff]  ;;  %s196_s19 = scalar_lea.vmem %s130_s18, 256  ;;  %p201_p1 = scmp.lt.s32.totalorder %s130_s18, %s130_s18 }
   0xb   :  { %167 = vmatpush3.msra.mxu0 %v33_v5  ;;  %v24_v14 = vld [vmem:[%s294_s1 + $0x10] sm:$0xff]  ;;  %v23_v15 = vld [vmem:[%s294_s1 + $0x8] sm:$0xff]  ;;  %v22_v16 = vld [vmem:[%s294_s1] sm:$0xff]  ;;  %p197_p0 = scmp.ne.s32.totalorder %s130_s18, %s196_s19  ;;  %p202_p2 = scmp.lt.s32.totalorder %s196_s19, %s196_s19 }
   0xc   :  { %168 = vmatprep.subr.mxu0 %v32_v6  ;;  %v21_v17 = vld [vmem:[%s293_s0 + $0x8] sm:$0xff] }
   0xd   :  { %169 = vmatpush3.msra.mxu0 %v32_v6  ;;  %p203_p3 = por %p202_p2, %p201_p1 }
   0xe   :  { %170 = vmatprep.subr.mxu0 %v31_v7 }
   0xf   :  { %171 = vmatpush3.msra.mxu0 %v31_v7  ;;  %p204_p4 = pnand %p203_p3, %p197_p0 }
  0x10   :  { %172 = vmatprep.subr.mxu0 %v30_v8 }
  0x11   :  { %173 = vmatpush3.msra.mxu0 %v30_v8 }
  0x12   :  { %174 = vmatprep.subr.mxu0 %v29_v9 }
  0x13   :  { %175 = vmatpush3.msra.mxu0 %v29_v9 }
  0x14   :  { %176 = vmatprep.subr.mxu0 %v28_v10 }
  0x15   :  { %177 = vmatpush3.msra.mxu0 %v28_v10 }
  0x16   :  { %178 = vmatprep.subr.mxu0 %v27_v11 }
  0x17   :  { %179 = vmatpush3.msra.mxu0 %v27_v11 }
  0x18   :  { %180 = vmatprep.subr.mxu0 %v26_v12 }
  0x19   :  { %181 = vmatpush3.msra.mxu0 %v26_v12 }
  0x1a   :  { %182 = vmatprep.subr.mxu0 %v25_v13 }
  0x1b   :  { %183 = vmatpush3.msra.mxu0 %v25_v13 }
  0x1c   :  { %184 = vmatprep.subr.mxu0 %v24_v14 }
  0x1d   :  { %185 = vmatpush3.msra.mxu0 %v24_v14 }
  0x1e   :  { %186 = vmatprep.subr.mxu0 %v23_v15 }
  0x1f   :  { %187 = vmatpush3.msra.mxu0 %v23_v15 }
  0x20   :  { %188 = vmatprep.subr.mxu0 %v22_v16 }
  0x21   :  { %189 = vmatpush3.msra.mxu0 %v22_v16 }
  0x22   :  { %191 = vmatmul.mubr.f32.vlgmr.msra.gmra.mxu0 %v21_v17 }
  0xe2   :  { %v192_v18 = vpop.f32.mrf.mxu0 }
  0xe3   :  { %123 = vst [vmem:[#allocation3 + $0x8] sm:$0xff] %v192_v18 }
  0xe4   :  { %v104_v19 = vpop.f32.mrf.mxu0 }
  0xe5   :  { %122 = vst [vmem:[#allocation3] sm:$0xff] %v104_v19 }
  0xe6   :  { %207 = shalt.err (!%p204_p4)
}
  0xe7   :  { %s219_s1 = smov 128   ;;  %s220_s20 = smov 8  }
  0xe8   :  { %135 = dma.vmem_to_hbm [thread:$0]  %s130_s18, 256, %s295_s2, [#allocation4], %s219_s1, %s219_s1, %s220_s20  }
  0xe9   :  { %216 = dma.done.wait [#allocation4], 256  }
  0xea   :  { %217 = vsyncadd [#allocation4], 4294967040 }
  0xeb   :  { %139 = vsyncpa [#allocation4], 1 }

</bundles_post_ra>
